<compile_context>
chip_gen: v6e
topology: v6e:2x2x1
jax: 0.10.0
libtpu: 0.0.40
codegen_flags: <defaults>
</compile_context>

<pallas_src>
import jax
import jax.numpy as jnp
from jax import lax
from jax.experimental import pallas as pl
from jax.experimental.pallas import tpu as pltpu


def _round_up(x, m):
    return (x + m - 1) // m * m


def _ceil_div(a, b):
    return -(-a // b)


def elemwise_kernel(e_ref, x_ref, w1_ref, b1_ref, w2_ref, b2_ref, o_ref):
    """One tile of atoms through all per-type subnets, fused into 2 matmuls."""
    x = x_ref[...]                          # [TM, D]
    e_row = e_ref[...]                      # [1, TM] int32, lane-dense
    n_types = w2_ref.shape[0]
    tm = x.shape[0]

    # torch list-index semantics: negative ids wrap; fully out-of-range ids
    # hit the IndexError branch and fall back to subnet 0.
    e_wrapped = jnp.where(e_row < 0, e_row + n_types, e_row)
    e_eff = jnp.where((e_wrapped < 0) | (e_wrapped >= n_types), 0, e_wrapped)

    # Layer 1 of every subnet at once: one wide MXU matmul + one EUP tanh.
    h = jnp.tanh(
        jnp.dot(x, w1_ref[...], preferred_element_type=jnp.float32)
        + b1_ref[...]                       # [1, T*H] broadcast over atoms
    )                                       # [TM, T*H] f32

    # Layer 2: block-diagonal transposed weights, contracted as an NT dot so
    # the result comes out with atoms on lanes ([T, TM]); the MXU does the
    # relayout for us and the final store is a full-width lane-dense row.
    y_t = lax.dot_general(
        w2_ref[...], h,                     # [T, T*H] x [TM, T*H] over T*H
        dimension_numbers=(((1,), (1,)), ((), ())),
        preferred_element_type=jnp.float32,
    ) + b2_ref[...]                         # [T, 1] broadcast -> [T, TM]

    # Select each atom's own type row (one-hot over the tiny sublane axis),
    # built directly from the lane-dense id row -> no in-kernel transposes.
    type_ids = lax.broadcasted_iota(jnp.int32, (n_types, tm), 0)   # [T, TM]
    out_row = jnp.sum(jnp.where(type_ids == e_eff, y_t, 0.0),
                      axis=0, keepdims=True)                        # [1, TM]
    o_ref[...] = out_row.astype(o_ref.dtype)


def _vmem_limit_bytes(tile_m, d, t, h, x_itemsize):
    """Scoped-VMEM limit sized from the tile, capped below physical VMEM."""
    lane = lambda n: _round_up(n, 128)      # last dim pads to 128 lanes
    sub = lambda n: _round_up(n, 8)         # second-to-last pads to 8 sublanes
    th = t * h
    desc = 2 * tile_m * lane(d) * x_itemsize        # double-buffered descriptors
    elem = 2 * sub(1) * tile_m * 4                  # (1, tile_m) i32 id rows
    outb = 2 * sub(1) * tile_m * 4                  # (1, tile_m) f32 out rows
    wts = (sub(d) * lane(th) + sub(1) * lane(th)
           + sub(t) * lane(th) + sub(t) * lane(1)) * 4   # fused weights
    inter = 3 * tile_m * lane(th) * 4               # h + matmul/compiler temps
    est = desc + elem + outb + wts + inter + (4 << 20)
    try:
        cap_phys = int(getattr(pltpu.get_tpu_info(), "vmem_capacity_bytes",
                               64 << 20))
    except Exception:
        cap_phys = 64 << 20                         # v7x-safe fallback
    cap = (cap_phys * 3) // 4                       # ~48 MiB v7x, ~96 MiB v5e/v6e
    return int(min(max(est, min(32 << 20, cap)), cap))


def elemwise_models(descriptors, elems, w1, b1, w2, b2, *, tile_m=4096):
    """descriptors: [N, D], elems: [N] int. Returns per-atom [N] f32.

    w1: [T, D, H], b1: [T, 1, H], w2: [T, H, 1], b2: [T, 1, 1].
    tile_m: atoms per grid step (rounded to a multiple of 128; capped so the
        grid has at least two balanced tiles for v7x's two TensorCores).
    If `descriptors` already arrive as bfloat16 they are used as-is for the
    first matmul (halves the dominant HBM stream on all generations); float32
    inputs are NOT down-cast in the wrapper since that would just add an
    un-hidden HBM pass.
    """
    N, D = descriptors.shape
    T, D2, H = w1.shape
    assert D2 == D, "descriptor width must match subnet input width"

    f32 = jnp.float32
    # ---- pack per-type subnets into fused weights (host/XLA side, once) ----
    w1_all = jnp.transpose(w1, (1, 0, 2)).reshape(D, T * H).astype(f32)
    b1_all = b1.reshape(1, T * H).astype(f32)
    eye_t = jnp.eye(T, dtype=f32)
    # Transposed block-diagonal layer-2: w2_bd_t[t, u*H + j] = (t==u)*w2[t,j,0]
    w2_bd_t = (eye_t[:, :, None]
               * w2[:, :, 0].astype(f32)[:, None, :]).reshape(T, T * H)
    b2_col = b2.reshape(T, 1).astype(f32)

    if descriptors.dtype == jnp.bfloat16:
        x = descriptors                     # already bf16 upstream: free win
        w1_all = w1_all.astype(jnp.bfloat16)
    else:
        x = descriptors.astype(f32)

    # ---- atom tiling: big lane-aligned tiles, but >= 2 balanced tiles ----
    half = _round_up(_ceil_div(N, 2), 128)
    tile_m = _round_up(max(128, min(int(tile_m), half)), 128)
    n_pad = _round_up(N, tile_m)
    n_tiles = n_pad // tile_m

    elems_i32 = elems.astype(jnp.int32)
    if n_pad != N:
        x = jnp.pad(x, ((0, n_pad - N), (0, 0)))
        elems_i32 = jnp.pad(elems_i32, (0, n_pad - N))
    elems_rows = elems_i32.reshape(n_tiles, 1, tile_m)   # lane-dense id rows

    vmem_limit = _vmem_limit_bytes(tile_m, D, T, H, x.dtype.itemsize)

    def build(single_buffer_weights):
        # Weights never change across the grid (constant index maps); request
        # a single pipeline buffer for them to save VMEM.
        wkw = ({"pipeline_mode": pl.Buffered(1)}
               if single_buffer_weights else {})
        return pl.pallas_call(
            elemwise_kernel,
            out_shape=jax.ShapeDtypeStruct((n_tiles, 1, tile_m), f32),
            grid_spec=pltpu.PrefetchScalarGridSpec(
                num_scalar_prefetch=0,
                grid=(n_tiles,),
                in_specs=[
                    pl.BlockSpec((None, 1, tile_m), lambda i: (i, 0, 0)),  # ids
                    pl.BlockSpec((tile_m, D), lambda i: (i, 0)),           # x
                    pl.BlockSpec((D, T * H), lambda i: (0, 0), **wkw),     # W1
                    pl.BlockSpec((1, T * H), lambda i: (0, 0), **wkw),     # b1
                    pl.BlockSpec((T, T * H), lambda i: (0, 0), **wkw),     # W2^T
                    pl.BlockSpec((T, 1), lambda i: (0, 0), **wkw),         # b2
                ],
                out_specs=pl.BlockSpec((None, 1, tile_m),
                                       lambda i: (i, 0, 0)),  # lane-dense out
            ),
            compiler_params=pltpu.CompilerParams(
                dimension_semantics=("parallel",),
                vmem_limit_bytes=vmem_limit,
            ),
        )

    args = (elems_rows, x, w1_all, b1_all, w2_bd_t, b2_col)
    try:
        out = build(True)(*args)
    except Exception:
        # Fallback: default double-buffered weights (costs only ~tens of KB).
        out = build(False)(*args)

    return out.reshape(n_pad)[:N]           # drop padded atoms


def reference(descriptors, elems, w1, b1, w2, b2):
    """Pure-JAX (f32) reference mirroring the torch loop-over-types semantics."""
    T = w1.shape[0]
    e = elems.astype(jnp.int32)
    e = jnp.where(e < 0, e + T, e)                       # negative ids wrap
    e = jnp.where((e < 0) | (e >= T), 0, e)              # IndexError -> subnet 0
    x = descriptors.astype(jnp.float32)
    out = jnp.zeros(descriptors.shape[0], jnp.float32)
    for t in range(T):
        h = jnp.tanh(x @ w1[t] + b1[t])
        y = (h @ w2[t] + b2[t]).reshape(-1)
        out = jnp.where(e == t, y, out)
    return out


if __name__ == "__main__":
    # Small shapes implied by the forward: N atoms, D descriptors/atom,
    # n_types per-element subnets, hidden width H.
    N, D, H, N_TYPES = 1000, 64, 32, 3

    key = jax.random.PRNGKey(0)
    k_x, k_e, k_w1, k_b1, k_w2, k_b2 = jax.random.split(key, 6)

    descriptors = jax.random.normal(k_x, (N, D), dtype=jnp.float32)
    # ids in [-1, N_TYPES]: -1 wraps to the last subnet, N_TYPES hits the
    # IndexError fallback (subnet 0) of the torch module.
    elems = jax.random.randint(k_e, (N,), -1, N_TYPES + 1).astype(jnp.int32)

    # Deterministic per-type subnet parameters: Linear(D,H) -> tanh -> Linear(H,1)
    w1 = 0.1 * jax.random.normal(k_w1, (N_TYPES, D, H), dtype=jnp.float32)
    b1 = 0.1 * jax.random.normal(k_b1, (N_TYPES, 1, H), dtype=jnp.float32)
    w2 = 0.1 * jax.random.normal(k_w2, (N_TYPES, H, 1), dtype=jnp.float32)
    b2 = 0.1 * jax.random.normal(k_b2, (N_TYPES, 1, 1), dtype=jnp.float32)

    per_atom = elemwise_models(descriptors, elems, w1, b1, w2, b2)
    per_atom = jax.block_until_ready(per_atom)

    ref = reference(descriptors, elems, w1, b1, w2, b2)
    assert per_atom.shape == (N,)
    # float32 compute (original module is f64); tolerance documented accordingly.
    assert jnp.allclose(per_atom, ref, atol=1e-4, rtol=1e-4), float(
        jnp.max(jnp.abs(per_atom - ref)))

    print("KERNEL_OK")
</pallas_src>

<mosaic_0001>
module attributes {stable_mosaic.version = 11 : i64} {
  func.func @elemwise_kernel(%arg0: i32, %arg1: memref<1x1x512xi32, #tpu.memory_space<vmem>>, %arg2: memref<512x64xf32, #tpu.memory_space<vmem>>, %arg3: memref<64x96xf32, #tpu.memory_space<vmem>>, %arg4: memref<1x96xf32, #tpu.memory_space<vmem>>, %arg5: memref<3x96xf32, #tpu.memory_space<vmem>>, %arg6: memref<3x1xf32, #tpu.memory_space<vmem>>, %arg7: memref<1x1x512xf32, #tpu.memory_space<vmem>>) attributes {dimension_semantics = [#tpu.dimension_semantics<parallel>], iteration_bounds = array<i64: 2>, scalar_prefetch = 0 : i64, scratch_operands = 0 : i64, tpu.core_type = #tpu.core_type<tc>, window_params = [{transform_indices = @transform_0, window_bounds = array<i64: 1, 1, 512>}, {transform_indices = @transform_1, window_bounds = array<i64: 512, 64>}, {pipeline_mode = #tpu.pipeline_mode<synchronous>, transform_indices = @transform_2, window_bounds = array<i64: 64, 96>}, {pipeline_mode = #tpu.pipeline_mode<synchronous>, transform_indices = @transform_3, window_bounds = array<i64: 1, 96>}, {pipeline_mode = #tpu.pipeline_mode<synchronous>, transform_indices = @transform_4, window_bounds = array<i64: 3, 96>}, {pipeline_mode = #tpu.pipeline_mode<synchronous>, transform_indices = @transform_5, window_bounds = array<i64: 3, 1>}, {transform_indices = @transform_6, window_bounds = array<i64: 1, 1, 512>}]} {
    %c0 = arith.constant 0 : index
    %c0_0 = arith.constant 0 : index
    %0 = vector.load %arg2[%c0, %c0_0] : memref<512x64xf32, #tpu.memory_space<vmem>>, vector<512x64xf32>
    %c0_1 = arith.constant 0 : index
    %c0_2 = arith.constant 0 : index
    %c0_3 = arith.constant 0 : index
    %1 = vector.load %arg1[%c0_1, %c0_2, %c0_3] : memref<1x1x512xi32, #tpu.memory_space<vmem>>, vector<1x1x512xi32>
    %2 = vector.shape_cast %1 : vector<1x1x512xi32> to vector<1x512xi32>
    %c0_i32 = arith.constant 0 : i32
    %3 = vector.broadcast %c0_i32 : i32 to vector<1x512xi32>
    %4 = arith.cmpi slt, %2, %3 : vector<1x512xi32>
    %c3_i32 = arith.constant 3 : i32
    %5 = vector.broadcast %c3_i32 : i32 to vector<1x512xi32>
    %6 = arith.addi %2, %5 : vector<1x512xi32>
    %7 = arith.select %4, %6, %2 : vector<1x512xi1>, vector<1x512xi32>
    %c0_i32_4 = arith.constant 0 : i32
    %8 = vector.broadcast %c0_i32_4 : i32 to vector<1x512xi32>
    %9 = arith.cmpi slt, %7, %8 : vector<1x512xi32>
    %c3_i32_5 = arith.constant 3 : i32
    %10 = vector.broadcast %c3_i32_5 : i32 to vector<1x512xi32>
    %11 = arith.cmpi sge, %7, %10 : vector<1x512xi32>
    %12 = arith.ori %9, %11 : vector<1x512xi1>
    %c0_i32_6 = arith.constant 0 : i32
    %13 = vector.broadcast %c0_i32_6 : i32 to vector<1x512xi32>
    %14 = arith.select %12, %13, %7 : vector<1x512xi1>, vector<1x512xi32>
    %c0_7 = arith.constant 0 : index
    %c0_8 = arith.constant 0 : index
    %15 = vector.load %arg3[%c0_7, %c0_8] : memref<64x96xf32, #tpu.memory_space<vmem>>, vector<64x96xf32>
    %cst = arith.constant dense<0.000000e+00> : vector<512x96xf32>
    %16 = tpu.matmul %0, %15, %cst {dimension_numbers = #tpu.dot_dimension_numbers<[1], [0], [0], [1], [0, 0, 1, 1], [], []>} : vector<512x64xf32>, vector<64x96xf32>, vector<512x96xf32> -> vector<512x96xf32>
    %c0_9 = arith.constant 0 : index
    %c0_10 = arith.constant 0 : index
    %17 = vector.load %arg4[%c0_9, %c0_10] : memref<1x96xf32, #tpu.memory_space<vmem>>, vector<1x96xf32>
    %18 = vector.broadcast %17 : vector<1x96xf32> to vector<512x96xf32>
    %19 = arith.addf %16, %18 : vector<512x96xf32>
    %20 = math.tanh %19 : vector<512x96xf32>
    %c0_11 = arith.constant 0 : index
    %c0_12 = arith.constant 0 : index
    %21 = vector.load %arg5[%c0_11, %c0_12] : memref<3x96xf32, #tpu.memory_space<vmem>>, vector<3x96xf32>
    %cst_13 = arith.constant dense<0.000000e+00> : vector<3x512xf32>
    %22 = tpu.matmul %21, %20, %cst_13 {dimension_numbers = #tpu.dot_dimension_numbers<[1], [1], [0], [0], [0, 0, 1, 0], [], []>} : vector<3x96xf32>, vector<512x96xf32>, vector<3x512xf32> -> vector<3x512xf32>
    %c0_14 = arith.constant 0 : index
    %c0_15 = arith.constant 0 : index
    %23 = vector.load %arg6[%c0_14, %c0_15] : memref<3x1xf32, #tpu.memory_space<vmem>>, vector<3x1xf32>
    %24 = vector.broadcast %23 : vector<3x1xf32> to vector<3x512xf32>
    %25 = arith.addf %22, %24 : vector<3x512xf32>
    %26 = tpu.iota {dimensions = array<i32: 0>} : vector<3x512xi32>
    %27 = vector.broadcast %14 : vector<1x512xi32> to vector<3x512xi32>
    %28 = arith.cmpi eq, %26, %27 : vector<3x512xi32>
    %cst_16 = arith.constant 0.000000e+00 : f32
    %29 = vector.broadcast %cst_16 : f32 to vector<3x512xf32>
    %30 = arith.select %28, %25, %29 : vector<3x512xi1>, vector<3x512xf32>
    %cst_17 = arith.constant dense<0.000000e+00> : vector<512xf32>
    %31 = vector.multi_reduction <add>, %30, %cst_17 [0] : vector<3x512xf32> to vector<512xf32>
    %32 = vector.shape_cast %31 : vector<512xf32> to vector<1x512xf32>
    %c0_18 = arith.constant 0 : index
    %c0_19 = arith.constant 0 : index
    %c0_20 = arith.constant 0 : index
    %33 = vector.load %arg7[%c0_18, %c0_19, %c0_20] : memref<1x1x512xf32, #tpu.memory_space<vmem>>, vector<1x1x512xf32>
    %34 = vector.shape_cast %33 : vector<1x1x512xf32> to vector<1x512xf32>
    %35 = vector.shape_cast %32 : vector<1x512xf32> to vector<1x1x512xf32>
    tpu.vector_store %arg7[%c0_18, %c0_19, %c0_20], %35 {strides = array<i32>} : memref<1x1x512xf32, #tpu.memory_space<vmem>>, vector<1x1x512xf32>,
    return
  }
  func.func @transform_0(%arg0: i32) -> (i32, i32, i32) {
    %c0_i32 = arith.constant 0 : i32
    %c0_i32_0 = arith.constant 0 : i32
    %c0_i32_1 = arith.constant 0 : i32
    return %arg0, %c0_i32, %c0_i32_0 : i32, i32, i32
  }
  func.func @transform_1(%arg0: i32) -> (i32, i32) {
    %c0_i32 = arith.constant 0 : i32
    %c0_i32_0 = arith.constant 0 : i32
    return %arg0, %c0_i32 : i32, i32
  }
  func.func @transform_2(%arg0: i32) -> (i32, i32) {
    %c0_i32 = arith.constant 0 : i32
    %c0_i32_0 = arith.constant 0 : i32
    %c0_i32_1 = arith.constant 0 : i32
    return %c0_i32, %c0_i32_0 : i32, i32
  }
  func.func @transform_3(%arg0: i32) -> (i32, i32) {
    %c0_i32 = arith.constant 0 : i32
    %c0_i32_0 = arith.constant 0 : i32
    %c0_i32_1 = arith.constant 0 : i32
    return %c0_i32, %c0_i32_0 : i32, i32
  }
  func.func @transform_4(%arg0: i32) -> (i32, i32) {
    %c0_i32 = arith.constant 0 : i32
    %c0_i32_0 = arith.constant 0 : i32
    %c0_i32_1 = arith.constant 0 : i32
    return %c0_i32, %c0_i32_0 : i32, i32
  }
  func.func @transform_5(%arg0: i32) -> (i32, i32) {
    %c0_i32 = arith.constant 0 : i32
    %c0_i32_0 = arith.constant 0 : i32
    %c0_i32_1 = arith.constant 0 : i32
    return %c0_i32, %c0_i32_0 : i32, i32
  }
  func.func @transform_6(%arg0: i32) -> (i32, i32, i32) {
    %c0_i32 = arith.constant 0 : i32
    %c0_i32_0 = arith.constant 0 : i32
    %c0_i32_1 = arith.constant 0 : i32
    return %arg0, %c0_i32, %c0_i32_0 : i32, i32, i32
  }
}

module attributes {stable_mosaic.version = 11 : i64} {
  func.func @elemwise_kernel(%arg0: i32, %arg1: memref<1x1x512xi32, #tpu.memory_space<vmem>>, %arg2: memref<512x64xf32, #tpu.memory_space<vmem>>, %arg3: memref<64x96xf32, #tpu.memory_space<vmem>>, %arg4: memref<1x96xf32, #tpu.memory_space<vmem>>, %arg5: memref<3x96xf32, #tpu.memory_space<vmem>>, %arg6: memref<3x1xf32, #tpu.memory_space<vmem>>, %arg7: memref<1x1x512xf32, #tpu.memory_space<vmem>>) attributes {dimension_semantics = [#tpu.dimension_semantics<parallel>], iteration_bounds = array<i64: 2>, scalar_prefetch = 0 : i64, scratch_operands = 0 : i64, tpu.core_type = #tpu.core_type<tc>, window_params = [{transform_indices = @transform_0, window_bounds = array<i64: 1, 1, 512>}, {transform_indices = @transform_1, window_bounds = array<i64: 512, 64>}, {pipeline_mode = #tpu.pipeline_mode<synchronous>, transform_indices = @transform_2, window_bounds = array<i64: 64, 96>}, {pipeline_mode = #tpu.pipeline_mode<synchronous>, transform_indices = @transform_3, window_bounds = array<i64: 1, 96>}, {pipeline_mode = #tpu.pipeline_mode<synchronous>, transform_indices = @transform_4, window_bounds = array<i64: 3, 96>}, {pipeline_mode = #tpu.pipeline_mode<synchronous>, transform_indices = @transform_5, window_bounds = array<i64: 3, 1>}, {transform_indices = @transform_6, window_bounds = array<i64: 1, 1, 512>}]} {
    %c0 = arith.constant 0 : index
    %c0_0 = arith.constant 0 : index
    %0 = vector.load %arg2[%c0, %c0_0] : memref<512x64xf32, #tpu.memory_space<vmem>>, vector<512x64xf32>
    %c0_1 = arith.constant 0 : index
    %c0_2 = arith.constant 0 : index
    %c0_3 = arith.constant 0 : index
    %1 = vector.load %arg1[%c0_1, %c0_2, %c0_3] : memref<1x1x512xi32, #tpu.memory_space<vmem>>, vector<1x1x512xi32>
    %2 = vector.shape_cast %1 : vector<1x1x512xi32> to vector<1x512xi32>
    %c0_i32 = arith.constant 0 : i32
    %3 = vector.broadcast %c0_i32 : i32 to vector<1x512xi32>
    %4 = arith.cmpi slt, %2, %3 : vector<1x512xi32>
    %c3_i32 = arith.constant 3 : i32
    %5 = vector.broadcast %c3_i32 : i32 to vector<1x512xi32>
    %6 = arith.addi %2, %5 : vector<1x512xi32>
    %7 = arith.select %4, %6, %2 : vector<1x512xi1>, vector<1x512xi32>
    %c0_i32_4 = arith.constant 0 : i32
    %8 = vector.broadcast %c0_i32_4 : i32 to vector<1x512xi32>
    %9 = arith.cmpi slt, %7, %8 : vector<1x512xi32>
    %c3_i32_5 = arith.constant 3 : i32
    %10 = vector.broadcast %c3_i32_5 : i32 to vector<1x512xi32>
    %11 = arith.cmpi sge, %7, %10 : vector<1x512xi32>
    %12 = arith.ori %9, %11 : vector<1x512xi1>
    %c0_i32_6 = arith.constant 0 : i32
    %13 = vector.broadcast %c0_i32_6 : i32 to vector<1x512xi32>
    %14 = arith.select %12, %13, %7 : vector<1x512xi1>, vector<1x512xi32>
    %c0_7 = arith.constant 0 : index
    %c0_8 = arith.constant 0 : index
    %15 = vector.load %arg3[%c0_7, %c0_8] : memref<64x96xf32, #tpu.memory_space<vmem>>, vector<64x96xf32>
    %cst = arith.constant dense<0.000000e+00> : vector<512x96xf32>
    %16 = tpu.matmul %0, %15, %cst {dimension_numbers = #tpu.dot_dimension_numbers<[1], [0], [0], [1], [0, 0, 1, 1], [], []>} : vector<512x64xf32>, vector<64x96xf32>, vector<512x96xf32> -> vector<512x96xf32>
    %c0_9 = arith.constant 0 : index
    %c0_10 = arith.constant 0 : index
    %17 = vector.load %arg4[%c0_9, %c0_10] : memref<1x96xf32, #tpu.memory_space<vmem>>, vector<1x96xf32>
    %18 = vector.broadcast %17 : vector<1x96xf32> to vector<512x96xf32>
    %19 = arith.addf %16, %18 : vector<512x96xf32>
    %20 = math.tanh %19 : vector<512x96xf32>
    %c0_11 = arith.constant 0 : index
    %c0_12 = arith.constant 0 : index
    %21 = vector.load %arg5[%c0_11, %c0_12] : memref<3x96xf32, #tpu.memory_space<vmem>>, vector<3x96xf32>
    %cst_13 = arith.constant dense<0.000000e+00> : vector<3x512xf32>
    %22 = tpu.matmul %21, %20, %cst_13 {dimension_numbers = #tpu.dot_dimension_numbers<[1], [1], [0], [0], [0, 0, 1, 0], [], []>} : vector<3x96xf32>, vector<512x96xf32>, vector<3x512xf32> -> vector<3x512xf32>
    %c0_14 = arith.constant 0 : index
    %c0_15 = arith.constant 0 : index
    %23 = vector.load %arg6[%c0_14, %c0_15] : memref<3x1xf32, #tpu.memory_space<vmem>>, vector<3x1xf32>
    %24 = vector.broadcast %23 : vector<3x1xf32> to vector<3x512xf32>
    %25 = arith.addf %22, %24 : vector<3x512xf32>
    %26 = tpu.iota {dimensions = array<i32: 0>} : vector<3x512xi32>
    %27 = vector.broadcast %14 : vector<1x512xi32> to vector<3x512xi32>
    %28 = arith.cmpi eq, %26, %27 : vector<3x512xi32>
    %cst_16 = arith.constant 0.000000e+00 : f32
    %29 = vector.broadcast %cst_16 : f32 to vector<3x512xf32>
    %30 = arith.select %28, %25, %29 : vector<3x512xi1>, vector<3x512xf32>
    %cst_17 = arith.constant dense<0.000000e+00> : vector<512xf32>
    %31 = vector.multi_reduction <add>, %30, %cst_17 [0] : vector<3x512xf32> to vector<512xf32>
    %32 = vector.shape_cast %31 : vector<512xf32> to vector<1x512xf32>
    %c0_18 = arith.constant 0 : index
    %c0_19 = arith.constant 0 : index
    %c0_20 = arith.constant 0 : index
    %33 = vector.load %arg7[%c0_18, %c0_19, %c0_20] : memref<1x1x512xf32, #tpu.memory_space<vmem>>, vector<1x1x512xf32>
    %34 = vector.shape_cast %33 : vector<1x1x512xf32> to vector<1x512xf32>
    %35 = vector.shape_cast %32 : vector<1x512xf32> to vector<1x1x512xf32>
    tpu.vector_store %arg7[%c0_18, %c0_19, %c0_20], %35 {strides = array<i32>} : memref<1x1x512xf32, #tpu.memory_space<vmem>>, vector<1x1x512xf32>,
    return
  }
  func.func @transform_0(%arg0: i32) -> (i32, i32, i32) {
    %c0_i32 = arith.constant 0 : i32
    %c0_i32_0 = arith.constant 0 : i32
    %c0_i32_1 = arith.constant 0 : i32
    return %arg0, %c0_i32, %c0_i32_0 : i32, i32, i32
  }
  func.func @transform_1(%arg0: i32) -> (i32, i32) {
    %c0_i32 = arith.constant 0 : i32
    %c0_i32_0 = arith.constant 0 : i32
    return %arg0, %c0_i32 : i32, i32
  }
  func.func @transform_2(%arg0: i32) -> (i32, i32) {
    %c0_i32 = arith.constant 0 : i32
    %c0_i32_0 = arith.constant 0 : i32
    %c0_i32_1 = arith.constant 0 : i32
    return %c0_i32, %c0_i32_0 : i32, i32
  }
  func.func @transform_3(%arg0: i32) -> (i32, i32) {
    %c0_i32 = arith.constant 0 : i32
    %c0_i32_0 = arith.constant 0 : i32
    %c0_i32_1 = arith.constant 0 : i32
    return %c0_i32, %c0_i32_0 : i32, i32
  }
  func.func @transform_4(%arg0: i32) -> (i32, i32) {
    %c0_i32 = arith.constant 0 : i32
    %c0_i32_0 = arith.constant 0 : i32
    %c0_i32_1 = arith.constant 0 : i32
    return %c0_i32, %c0_i32_0 : i32, i32
  }
  func.func @transform_5(%arg0: i32) -> (i32, i32) {
    %c0_i32 = arith.constant 0 : i32
    %c0_i32_0 = arith.constant 0 : i32
    %c0_i32_1 = arith.constant 0 : i32
    return %c0_i32, %c0_i32_0 : i32, i32
  }
  func.func @transform_6(%arg0: i32) -> (i32, i32, i32) {
    %c0_i32 = arith.constant 0 : i32
    %c0_i32_0 = arith.constant 0 : i32
    %c0_i32_1 = arith.constant 0 : i32
    return %arg0, %c0_i32, %c0_i32_0 : i32, i32, i32
  }
}

</mosaic_0001>

<bundles_post_ra>
// kernel: tpu_custom_call.1
= control target key start
LH: loop header
LB: loop body
LE: loop exit
PB: predicated region body
PF: predicated region fallthrough
CT: control target
= control target key end

     0   :  { %11 = vsyncpa [#allocation3], 0  ;;  %s2732_s0 = inlined_call_operand.vmem [shape: s32[2,1,512], index: 0, kind: input, shape index: {}]   ;;  %s2733_s1 = inlined_call_operand.vmem [shape: f32[1024,64], index: 1, kind: input, shape index: {}]   ;;  %s2734_s2 = inlined_call_operand.vmem [shape: f32[64,96], index: 2, kind: input, shape index: {}]   ;;  %s2735_s3 = inlined_call_operand.vmem [shape: f32[1,96], index: 3, kind: input, shape index: {}]   ;;  %s2736_s4 = inlined_call_operand.vmem [shape: f32[3,96], index: 4, kind: input, shape index: {}]   ;;  %s2737_s5 = inlined_call_operand.vmem [shape: f32[3,1], index: 5, kind: input, shape index: {}]   ;;  %s2738_s6 = inlined_call_operand.hbm [shape: f32[2,1,512], index: 6, kind: output, shape index: {}]  }
   0x1   :  { %13 = vsyncpa [#allocation3 + $0x1], 0  ;;  %s2185_s21 = smov 0   ;;  %s2187_s22 = smov 0  }
   0x2   :  { %s2189_s23 = smov 0   ;;  %s2191_s24 = smov 0  }
   0x3 LB: > { %s2206_s25 = sadd.s32 4294967295, %s2145_s24   ;;  %s1518_s26 = sadd.s32 4294967294, %s2145_s24   ;;  %s2145_s24 = sphi %s2191_s24, %s2744_s24   ;;  %s2141_s23 = sphi %s2189_s23, %s2743_s23   ;;  %s2137_s22 = sphi %s2187_s22, %s2742_s22   ;;  %s2133_s21 = sphi %s2185_s21, %s2741_s21  }
   0x4   : > { %s2210_s27 = sadd.s32 1, %s2145_s24   ;;  %s162_s28 = sadd.s32 1, %s2141_s23 }
   0x5   : > { %s159_s29 = ssub.s32 %s2145_s24, %s2210_s27  ;;  %p172_p0 = scmp.ne.s32.totalorder %s2141_s23, %s2137_s22 }
   0x6   : > { %p160_p1 = scmp.eq.s32.totalorder %s159_s29, 0  ;;  %p173_p2 = scmp.eq.s32.totalorder %s2206_s25, 1 }
   0x7   : > { %p178_p3 = scmp.ne.s32.totalorder %s2137_s22, %s2133_s21  ;;  %p179_p4 = scmp.eq.s32.totalorder %s1518_s26, 1 }
   0x8   : > { %s2221_s30 = scalar_select %p160_p1, %s2141_s23, %s162_s28  }
   0x9   : > { %p2223_p5 = por %p173_p2, %p172_p0  ;;  %p2227_p6 = por %p179_p4, %p178_p3 }
   0xa   : > { %p1521_p7 = scmp.ge.s32.totalorder %s2145_s24, 1  ;;  %p225_p8 = scmp.lt.s32.totalorder %s2145_s24, 3 }
   0xc   : > { %p226_p9 = pnand %p1521_p7, %p225_p8 }
   0xd   : > { %s2240_s13 = sshll.u32 (!%p226_p9), %s2206_s25, 6  ;;  %p259_p11 = scmp.lt.s32.totalorder (!%p226_p9), %s2206_s25, 1 }
   0xe   : > { %229 = sbr.rel (%p226_p9) target bundleno = 665 (0x299), region = 44  ;;  %p264_p10 = scmp.lt.s32.totalorder (!%p226_p9), %s2240_s13, 127 }
   0xf   : > { %s1445_s18 = scalar_lea.hbm (!%p226_p9), %s2738_s6, %s2240_s13  ;;  %s2149_s26 = smov (!%p226_p9), [#allocation2]  }
  0x10   : > { %s2089_s28 = sshll.u32 (!%p226_p9), %s2149_s26, 4  ;;  %s2090_s28 = int_to_ptr.vmem [resolvable:$false] %s2089_s28 }
  0x13   : > { %v348_v0 = vld [vmem:[%s2734_s2 + $0x38] sm:$0xff]  ;;  %v347_v1 = vld [vmem:[%s2734_s2 + $0x30] sm:$0xff]  ;;  %v346_v2 = vld [vmem:[%s2734_s2 + $0x28] sm:$0xff]  ;;  %s265_s16 = scalar_select %p264_p10, %s2240_s13, 127  ;;  %vm356_vm0 = vcmask 523264   ;;  %vm1005_vm1 = vcmask 785408  }
  0x14   : > { %1803 = vmatprep.subr.mxu0 %v348_v0  ;;  %v345_v3 = vld [vmem:[%s2734_s2 + $0x20] sm:$0xff]  ;;  %v344_v4 = vld [vmem:[%s2734_s2 + $0x18] sm:$0xff]  ;;  %v343_v6 = vld [vmem:[%s2734_s2 + $0x10] sm:$0xff]  ;;  %s2746_s25 = smov (!%p259_p11, %s2206_s25), 1  ;;  %vm1369_vm8 = vcmask 1042432  }
  0x15   : > { %1804 = vmatpush3.msra.mxu0 %v348_v0  ;;  %s1525_s19 = sshll.u32 %s265_s16, 3  ;;  %v342_v7 = vld [vmem:[%s2734_s2 + $0x8] sm:$0xff]  ;;  %v341_v8 = vld [vmem:[%s2734_s2] sm:$0xff]  ;;  %s1523_s29 = sshll.u32 %s2746_s25, 2 }
  0x16   : > { %1805 = vmatprep.subr.mxu0 %v347_v1  ;;  %s2256_s9 = scalar_lea.vmem %s2733_s1, %s1525_s19  ;;  %s262_s11 = scalar_lea.vmem %s2732_s0, %s1523_s29 }
  0x17   : > { %1806 = vmatpush3.msra.mxu0 %v347_v1  ;;  %v269_v5 = vld [vmem:[%s2256_s9] sm:$0xff]  ;;  %v270_v9 = vld [vmem:[%s2256_s9 + $0x8] sm:$0xff]  ;;  %v271_v10 = vld [vmem:[%s2256_s9 + $0x10] sm:$0xff]  ;;  %s256_s25 = sand.u32 1, %s2137_s22   ;;  %s2091_s29 = scalar_lea.vmem %s2090_s28, 128 }
  0x18   : > { %1807 = vmatprep.subr.mxu0 %v346_v2  ;;  %1819 = vmatprep.mubr.msk.f32.mxu0 %vm356_vm0, %v269_v5  ;;  %v272_v11 = vld [vmem:[%s2256_s9 + $0x18] sm:$0xff]  ;;  %v273_v12 = vld [vmem:[%s2256_s9 + $0x20] sm:$0xff]  ;;  %v274_v13 = vld [vmem:[%s2256_s9 + $0x28] sm:$0xff]  ;;  %s1522_s12 = sshll.u32 %s256_s25, 2  ;;  %s1433_s19 = scalar_lea.sflag [#allocation3], %s256_s25 }
  0x19   : > { %1808 = vmatpush3.msra.mxu0 %v346_v2  ;;  %v275_v14 = vld [vmem:[%s2256_s9 + $0x30] sm:$0xff]  ;;  %v276_v15 = vld [vmem:[%s2256_s9 + $0x38] sm:$0xff]  ;;  %v277_v16 = vld [vmem:[%s2256_s9 + $0x40] sm:$0xff]  ;;  %s258_s14 = scalar_lea.vmem [#allocation2], %s1522_s12 }
  0x1a   : > { %1809 = vmatprep.subr.mxu0 %v345_v3  ;;  %v278_v17 = vld [vmem:[%s2256_s9 + $0x48] sm:$0xff]  ;;  %v279_v18 = vld [vmem:[%s2256_s9 + $0x50] sm:$0xff]  ;;  %v280_v19 = vld [vmem:[%s2256_s9 + $0x58] sm:$0xff]  ;;  %s1447_s15 = sshll.u32 %s258_s14, 4  ;;  %s1448_s15 = int_to_ptr.vmem [resolvable:$true] %s1447_s15 }
  0x1b   : > { %1810 = vmatpush3.msra.mxu0 %v345_v3  ;;  %v281_v20 = vld [vmem:[%s2256_s9 + $0x60] sm:$0xff]  ;;  %v282_v21 = vld [vmem:[%s2256_s9 + $0x68] sm:$0xff]  ;;  %v283_v22 = vld [vmem:[%s2256_s9 + $0x70] sm:$0xff]  ;;  %s2085_s20 = scalar_lea.vmem %s1448_s15, 64  ;;  %p2092_p1 = scmp.lt.s32.totalorder %s1448_s15, %s2090_s28 }
  0x1c   : > { %1811 = vmatprep.subr.mxu0 %v344_v4  ;;  %v284_v23 = vld [vmem:[%s2256_s9 + $0x78] sm:$0xff]  ;;  %v285_v24 = vld [vmem:[%s2256_s9 + $0x80] sm:$0xff]  ;;  %v286_v25 = vld [vmem:[%s2256_s9 + $0x88] sm:$0xff]  ;;  %p2086_p12 = scmp.ne.s32.totalorder %s1448_s15, %s2085_s20  ;;  %p2093_p2 = scmp.lt.s32.totalorder %s2091_s29, %s2085_s20 }
  0x1d   : > { %1812 = vmatpush3.msra.mxu0 %v344_v4  ;;  %v287_v26 = vld [vmem:[%s2256_s9 + $0x90] sm:$0xff]  ;;  %v288_v27 = vld [vmem:[%s2256_s9 + $0x98] sm:$0xff]  ;;  %v289_v28 = vld [vmem:[%s2256_s9 + $0xa0] sm:$0xff] }
  0x1e   : > { %1813 = vmatprep.subr.mxu0 %v343_v6  ;;  %v290_v29 = vld [vmem:[%s2256_s9 + $0xa8] sm:$0xff]  ;;  %v291_v30 = vld [vmem:[%s2256_s9 + $0xb0] sm:$0xff]  ;;  %v292_v31 = vld [vmem:[%s2256_s9 + $0xb8] sm:$0xff]  ;;  %p2087_p13 = pnand %p2086_p12, %p2223_p5  ;;  %p2094_p3 = por %p2093_p2, %p2092_p1 }
  0x1f   : > { %1814 = vmatpush3.msra.mxu0 %v343_v6  ;;  %v293_v32 = vld [vmem:[%s2256_s9 + $0xc0] sm:$0xff]  ;;  %v294_v33 = vld [vmem:[%s2256_s9 + $0xc8] sm:$0xff]  ;;  %v295_v34 = vld [vmem:[%s2256_s9 + $0xd0] sm:$0xff] }
  0x20   : > { %1815 = vmatprep.subr.mxu0 %v342_v7  ;;  %v296_v35 = vld [vmem:[%s2256_s9 + $0xd8] sm:$0xff]  ;;  %v297_v36 = vld [vmem:[%s2256_s9 + $0xe0] sm:$0xff]  ;;  %v298_v37 = vld [vmem:[%s2256_s9 + $0xe8] sm:$0xff]  ;;  %p2088_p0 = pneg %p2087_p13 }
  0x21   : > { %1816 = vmatpush3.msra.mxu0 %v342_v7  ;;  %v299_v38 = vld [vmem:[%s2256_s9 + $0xf0] sm:$0xff]  ;;  %v300_v39 = vld [vmem:[%s2256_s9 + $0xf8] sm:$0xff]  ;;  %v301_v40 = vld [vmem:[%s2256_s9 + $0x100] sm:$0xff] }
  0x22   : > { %1817 = vmatprep.subr.mxu0 %v341_v8  ;;  %v302_v41 = vld [vmem:[%s2256_s9 + $0x108] sm:$0xff]  ;;  %v303_v42 = vld [vmem:[%s2256_s9 + $0x110] sm:$0xff]  ;;  %v304_v43 = vld [vmem:[%s2256_s9 + $0x118] sm:$0xff]  ;;  %p2095_p4 = pnand %p2094_p3, %p2088_p0 }
  0x23   : > { %1818 = vmatpush3.msra.mxu0 %v341_v8  ;;  %v305_v44 = vld [vmem:[%s2256_s9 + $0x120] sm:$0xff]  ;;  %v306_v45 = vld [vmem:[%s2256_s9 + $0x128] sm:$0xff]  ;;  %v307_v46 = vld [vmem:[%s2256_s9 + $0x130] sm:$0xff] }
  0x24   : > { %1820 = vmatmul.mubr.msk.f32.vlgmr.msra.gmra.mxu0 %vm356_vm0, %v270_v9  ;;  %v308_v47 = vld [vmem:[%s2256_s9 + $0x138] sm:$0xff]  ;;  %v309_v48 = vld [vmem:[%s2256_s9 + $0x140] sm:$0xff]  ;;  %v310_v49 = vld [vmem:[%s2256_s9 + $0x148] sm:$0xff] }
  0x25   : > { %1822 = vmatprep.mubr.msk.f32.mxu0 %vm356_vm0, %v271_v10  ;;  %v311_v50 = vld [vmem:[%s2256_s9 + $0x150] sm:$0xff]  ;;  %v312_v51 = vld [vmem:[%s2256_s9 + $0x158] sm:$0xff]  ;;  %v313_v52 = vld [vmem:[%s2256_s9 + $0x160] sm:$0xff] }
  0x26   : > { %v314_v53 = vld [vmem:[%s2256_s9 + $0x168] sm:$0xff]  ;;  %v315_v54 = vld [vmem:[%s2256_s9 + $0x170] sm:$0xff]  ;;  %v316_v55 = vld [vmem:[%s2256_s9 + $0x178] sm:$0xff] }
  0x27   : > { %v317_v56 = vld [vmem:[%s2256_s9 + $0x180] sm:$0xff]  ;;  %v318_v57 = vld [vmem:[%s2256_s9 + $0x188] sm:$0xff]  ;;  %v319_v58 = vld [vmem:[%s2256_s9 + $0x190] sm:$0xff] }
  0x28   : > { %1823 = vmatmul.mubr.msk.f32.gmra.mxu0 %vm356_vm0, %v272_v11  ;;  %v320_v59 = vld [vmem:[%s2256_s9 + $0x198] sm:$0xff]  ;;  %v321_v60 = vld [vmem:[%s2256_s9 + $0x1a0] sm:$0xff]  ;;  %v322_v61 = vld [vmem:[%s2256_s9 + $0x1a8] sm:$0xff] }
  0x29   : > { %1825 = vmatprep.mubr.msk.f32.mxu0 %vm356_vm0, %v273_v12  ;;  %v323_v62 = vld [vmem:[%s2256_s9 + $0x1b0] sm:$0xff]  ;;  %v324_v63 = vld [vmem:[%s2256_s9 + $0x1b8] sm:$0xff]  ;;  %v325_v0 = vld [vmem:[%s2256_s9 + $0x1c0] sm:$0xff] }
  0x2a   : > { %v326_v1 = vld [vmem:[%s2256_s9 + $0x1c8] sm:$0xff]  ;;  %v327_v2 = vld [vmem:[%s2256_s9 + $0x1d0] sm:$0xff]  ;;  %v328_v3 = vld [vmem:[%s2256_s9 + $0x1d8] sm:$0xff] }
  0x2b   : > { %v329_v4 = vld [vmem:[%s2256_s9 + $0x1e0] sm:$0xff]  ;;  %v330_v5 = vld [vmem:[%s2256_s9 + $0x1e8] sm:$0xff]  ;;  %v331_v6 = vld [vmem:[%s2256_s9 + $0x1f0] sm:$0xff] }
  0x2c   : > { %1826 = vmatmul.mubr.msk.f32.gmra.mxu0 %vm356_vm0, %v274_v13  ;;  %v332_v7 = vld [vmem:[%s2256_s9 + $0x1f8] sm:$0xff] }
  0x2d   : > { %1828 = vmatprep.mubr.msk.f32.mxu0 %vm356_vm0, %v275_v14  ;;  %v2410_v14 = vld [vmem:[%s2736_s4] sm:$0x7] }
  0x2e   : > { %1767 = vmatprep.mubr.msk.f32.mxu1 %vm1005_vm1, %v2410_v14 }
  0x30   : > { %1829 = vmatmul.mubr.msk.f32.gmra.mxu0 %vm356_vm0, %v276_v15 }
  0x31   : > { %1831 = vmatprep.mubr.msk.f32.mxu0 %vm356_vm0, %v277_v16 }
  0x34   : > { %1832 = vmatmul.mubr.msk.f32.gmra.mxu0 %vm356_vm0, %v278_v17 }
  0x35   : > { %1834 = vmatprep.mubr.msk.f32.mxu0 %vm356_vm0, %v279_v18 }
  0x38   : > { %1835 = vmatmul.mubr.msk.f32.gmra.mxu0 %vm356_vm0, %v280_v19 }
  0x39   : > { %1837 = vmatprep.mubr.msk.f32.mxu0 %vm356_vm0, %v281_v20 }
  0x3c   : > { %1838 = vmatmul.mubr.msk.f32.gmra.mxu0 %vm356_vm0, %v282_v21 }
  0x3d   : > { %1840 = vmatprep.mubr.msk.f32.mxu0 %vm356_vm0, %v283_v22 }
  0x40   : > { %1841 = vmatmul.mubr.msk.f32.gmra.mxu0 %vm356_vm0, %v284_v23 }
  0x41   : > { %1843 = vmatprep.mubr.msk.f32.mxu0 %vm356_vm0, %v285_v24 }
  0x44   : > { %1844 = vmatmul.mubr.msk.f32.gmra.mxu0 %vm356_vm0, %v286_v25 }
  0x45   : > { %1846 = vmatprep.mubr.msk.f32.mxu0 %vm356_vm0, %v287_v26 }
  0x48   : > { %1847 = vmatmul.mubr.msk.f32.gmra.mxu0 %vm356_vm0, %v288_v27 }
  0x49   : > { %1849 = vmatprep.mubr.msk.f32.mxu0 %vm356_vm0, %v289_v28 }
  0x4c   : > { %1850 = vmatmul.mubr.msk.f32.gmra.mxu0 %vm356_vm0, %v290_v29 }
  0x4d   : > { %1852 = vmatprep.mubr.msk.f32.mxu0 %vm356_vm0, %v291_v30 }
  0x50   : > { %1853 = vmatmul.mubr.msk.f32.gmra.mxu0 %vm356_vm0, %v292_v31 }
  0x51   : > { %1855 = vmatprep.mubr.msk.f32.mxu0 %vm356_vm0, %v293_v32 }
  0x54   : > { %1856 = vmatmul.mubr.msk.f32.gmra.mxu0 %vm356_vm0, %v294_v33 }
  0x55   : > { %1858 = vmatprep.mubr.msk.f32.mxu0 %vm356_vm0, %v295_v34 }
  0x58   : > { %1859 = vmatmul.mubr.msk.f32.gmra.mxu0 %vm356_vm0, %v296_v35 }
  0x59   : > { %1861 = vmatprep.mubr.msk.f32.mxu0 %vm356_vm0, %v297_v36 }
  0x5c   : > { %1862 = vmatmul.mubr.msk.f32.gmra.mxu0 %vm356_vm0, %v298_v37 }
  0x5d   : > { %1864 = vmatprep.mubr.msk.f32.mxu0 %vm356_vm0, %v299_v38 }
  0x60   : > { %1865 = vmatmul.mubr.msk.f32.gmra.mxu0 %vm356_vm0, %v300_v39  ;;  %v2441_v39 = vld [vmem:[%s2735_s3] ss:$0 sm:$0xff] }
  0x61   : > { %1867 = vmatprep.mubr.msk.f32.mxu0 %vm356_vm0, %v301_v40 }
  0x64   : > { %1868 = vmatmul.mubr.msk.f32.gmra.mxu0 %vm356_vm0, %v302_v41 }
  0x65   : > { %1870 = vmatprep.mubr.msk.f32.mxu0 %vm356_vm0, %v303_v42 }
  0x68   : > { %1871 = vmatmul.mubr.msk.f32.gmra.mxu0 %vm356_vm0, %v304_v43 }
  0x69   : > { %1873 = vmatprep.mubr.msk.f32.mxu0 %vm356_vm0, %v305_v44 }
  0x6c   : > { %1874 = vmatmul.mubr.msk.f32.gmra.mxu0 %vm356_vm0, %v306_v45 }
  0x6d   : > { %1876 = vmatprep.mubr.msk.f32.mxu0 %vm356_vm0, %v307_v46 }
  0x70   : > { %1877 = vmatmul.mubr.msk.f32.gmra.mxu0 %vm356_vm0, %v308_v47 }
  0x71   : > { %1879 = vmatprep.mubr.msk.f32.mxu0 %vm356_vm0, %v309_v48 }
  0x74   : > { %1880 = vmatmul.mubr.msk.f32.gmra.mxu0 %vm356_vm0, %v310_v49 }
  0x75   : > { %1882 = vmatprep.mubr.msk.f32.mxu0 %vm356_vm0, %v311_v50 }
  0x78   : > { %1883 = vmatmul.mubr.msk.f32.gmra.mxu0 %vm356_vm0, %v312_v51 }
  0x79   : > { %1885 = vmatprep.mubr.msk.f32.mxu0 %vm356_vm0, %v313_v52 }
  0x7c   : > { %1886 = vmatmul.mubr.msk.f32.gmra.mxu0 %vm356_vm0, %v314_v53 }
  0x7d   : > { %1888 = vmatprep.mubr.msk.f32.mxu0 %vm356_vm0, %v315_v54 }
  0x80   : > { %1889 = vmatmul.mubr.msk.f32.gmra.mxu0 %vm356_vm0, %v316_v55 }
  0x81   : > { %1891 = vmatprep.mubr.msk.f32.mxu0 %vm356_vm0, %v317_v56 }
  0x84   : > { %1892 = vmatmul.mubr.msk.f32.gmra.mxu0 %vm356_vm0, %v318_v57 }
  0x85   : > { %1894 = vmatprep.mubr.msk.f32.mxu0 %vm356_vm0, %v319_v58 }
  0x88   : > { %1895 = vmatmul.mubr.msk.f32.gmra.mxu0 %vm356_vm0, %v320_v59 }
  0x89   : > { %1897 = vmatprep.mubr.msk.f32.mxu0 %vm356_vm0, %v321_v60 }
  0x8c   : > { %1898 = vmatmul.mubr.msk.f32.gmra.mxu0 %vm356_vm0, %v322_v61 }
  0x8d   : > { %1900 = vmatprep.mubr.msk.f32.mxu0 %vm356_vm0, %v323_v62  ;;  %v999_v62 = vld [vmem:[%s2737_s5] sm:$0x7] }
  0x90   : > { %1901 = vmatmul.mubr.msk.f32.gmra.mxu0 %vm356_vm0, %v324_v63 }
  0x91   : > { %1903 = vmatprep.mubr.msk.f32.mxu0 %vm356_vm0, %v325_v0 }
  0x94   : > { %1904 = vmatmul.mubr.msk.f32.gmra.mxu0 %vm356_vm0, %v326_v1  ;;  %v2147_v1 = vmov 0  }
  0x95   : > { %1906 = vmatprep.mubr.msk.f32.mxu0 %vm356_vm0, %v327_v2  ;;  %1956 = vset.pattern.permute.xlu0 %v2147_v1 }
  0x96   : > { %1002 = vperm.xlu0 %1956, %v999_v62  }
  0x98   : > { %1907 = vmatmul.mubr.msk.f32.gmra.mxu0 %vm356_vm0, %v328_v3 }
  0x99   : > { %1909 = vmatprep.mubr.msk.f32.mxu0 %vm356_vm0, %v329_v4 }
  0x9c   : > { %1910 = vmatmul.mubr.msk.f32.gmra.mxu0 %vm356_vm0, %v330_v5 }
  0x9d   : > { %1912 = vmatprep.mubr.msk.f32.mxu0 %vm356_vm0, %v331_v6 }
  0xa0   : > { %1913 = vmatmul.mubr.msk.f32.gmra.mxu0 %vm356_vm0, %v332_v7 }
  0xe4   : > { %v2395_v8 = vpop.f32.mrf.mxu0 }
  0xe6   : > { %v2397_v9 = vpop.f32.mrf.mxu0 }
  0xe8   : > { %v2399_v10 = vpop.f32.mrf.mxu0 }
  0xe9   : > { %v631_v62 = vadd.f32 %v2399_v10, %v2441_v39 }
  0xea   : > { %v2401_v11 = vpop.f32.mrf.mxu0 }
  0xec   : > { %v2403_v12 = vpop.f32.mrf.mxu0 }
  0xee   : > { %v2405_v13 = vpop.f32.mrf.mxu0 }
  0xf0   : > { %v2414_v15 = vpop.f32.mrf.mxu0 }
  0xf2   : > { %v2416_v16 = vpop.f32.mrf.mxu0 }
  0xf4   : > { %v2418_v17 = vpop.f32.mrf.mxu0 }
  0xf6   : > { %v2420_v18 = vpop.f32.mrf.mxu0 }
  0xf8   : > { %v1836_v19 = vpop.f32.mrf.mxu0 }
  0xf9   : > { %v671_v58 = vadd.f32 %v1836_v19, %v2441_v39  ;;  %v661_v19 = vadd.f32 %v2418_v17, %v2441_v39 }
  0xfa   : > { %v665_v20 = vpop.f32.mrf.mxu0 }
  0xfb   : > { %v666_v2 = vadd.f32 %v2441_v39, %v665_v20 }
  0xfc   : > { %v1839_v21 = vpop.f32.mrf.mxu0 }
  0xfd   : > { %v681_v49 = vadd.f32 %v1839_v21, %v2441_v39 }
  0xfe   : > { %v675_v22 = vpop.f32.mrf.mxu0 }
  0xff   : > { %v676_v53 = vadd.f32 %v2441_v39, %v675_v22 }
 0x100   : > { %v1842_v23 = vpop.f32.mrf.mxu0 }
 0x101   : > { %v691_v40 = vadd.f32 %v1842_v23, %v2441_v39 }
 0x102   : > { %v685_v24 = vpop.f32.mrf.mxu0 }
 0x103   : > { %v686_v45 = vadd.f32 %v2441_v39, %v685_v24 }
 0x104   : > { %v2422_v25 = vpop.f32.mrf.mxu0 }
 0x106   : > { %v2424_v26 = vpop.f32.mrf.mxu0 }
 0x108   : > { %v2426_v27 = vpop.f32.mrf.mxu0 }
 0x10a   : > { %v2428_v28 = vpop.f32.mrf.mxu0 }
 0x10b   : > { %v706_v1 = vadd.f32 %v2441_v39, %v2428_v28 }
 0x10c   : > { %v2430_v29 = vpop.f32.mrf.mxu0 }
 0x10e   : > { %v2432_v30 = vpop.f32.mrf.mxu0 }
 0x110   : > { %v2434_v31 = vpop.f32.mrf.mxu0 }
 0x112   : > { %v2436_v32 = vpop.f32.mrf.mxu0 }
 0x114   : > { %v1857_v33 = vpop.f32.mrf.mxu0 }
 0x115   : > { %v741_v5 = vadd.f32 %v1857_v33, %v2441_v39  ;;  %v656_v33 = vadd.f32 %v2441_v39, %v2420_v18 }
 0x116   : > { %v735_v34 = vpop.f32.mrf.mxu0 }
 0x117   : > { %v736_v22 = vadd.f32 %v2441_v39, %v735_v34 }
 0x118   : > { %v1860_v35 = vpop.f32.mrf.mxu0 }
 0x119   : > { %v751_v55 = vadd.f32 %v1860_v35, %v2441_v39 }
 0x11a   : > { %v745_v36 = vpop.f32.mrf.mxu0 }
 0x11b   : > { %v746_v61 = vadd.f32 %v2441_v39, %v745_v36  ;;  %v731_v36 = vadd.f32 %v2434_v31, %v2441_v39 }
 0x11c   : > { %v1863_v37 = vpop.f32.mrf.mxu0 }
 0x11d   : > { %v761_v47 = vadd.f32 %v1863_v37, %v2441_v39 }
 0x11e   : > { %v755_v38 = vpop.f32.mrf.mxu0 }
 0x11f   : > { %v756_v51 = vadd.f32 %v2441_v39, %v755_v38  ;;  %v651_v38 = vadd.f32 %v2414_v15, %v2441_v39 }
 0x120   : > { %v1866_v41 = vpop.f32.mrf.mxu0 }
 0x121   : > { %v771_v42 = vadd.f32 %v1866_v41, %v2441_v39  ;;  %v726_v41 = vadd.f32 %v2441_v39, %v2436_v32 }
 0x122   : > { %v765_v43 = vpop.f32.mrf.mxu0 }
 0x123   : > { %1957 = vtanh.f32 %v771_v42  ;;  %v766_v44 = vadd.f32 %v2441_v39, %v765_v43  ;;  %v646_v43 = vadd.f32 %v2441_v39, %v2416_v16 }
 0x124   : > { %1959 = vtanh.f32 %v691_v40  ;;  %v2447_v46 = vpop.f32.mrf.mxu0 }
 0x125   : > { %1961 = vtanh.f32 %v766_v44 }
 0x126   : > { %v2450_v48 = vpop.f32.mrf.mxu0  ;;  %1963 = vtanh.f32 %v686_v45  ;;  %v721_v45 = vadd.f32 %v2430_v29, %v2441_v39 }
 0x127   : > { %1965 = vtanh.f32 %v761_v47 }
 0x128   : > { %v2453_v50 = vpop.f32.mrf.mxu0  ;;  %1967 = vtanh.f32 %v681_v49  ;;  %v641_v49 = vadd.f32 %v2403_v12, %v2441_v39 }
 0x129   : > { %1969 = vtanh.f32 %v756_v51 }
 0x12a   : > { %v2456_v52 = vpop.f32.mrf.mxu0  ;;  %1971 = vtanh.f32 %v676_v53  ;;  %v716_v53 = vadd.f32 %v2441_v39, %v2432_v30 }
 0x12b   : > { %1973 = vtanh.f32 %v751_v55 }
 0x12c   : > { %v2459_v54 = vpop.f32.mrf.mxu0  ;;  %1975 = vtanh.f32 %v671_v58 }
 0x12d   : > { %1977 = vtanh.f32 %v746_v61 }
 0x12e   : > { %v2462_v56 = vpop.f32.mrf.mxu0  ;;  %1979 = vtanh.f32 %v666_v2 }
 0x12f   : > { %1981 = vtanh.f32 %v741_v5 }
 0x130   : > { %v1958_v57 = vpop.eup %1957  ;;  %v2465_v59 = vpop.f32.mrf.mxu0  ;;  %1983 = vtanh.f32 %v661_v19 }
 0x131   : > { %v1960_v60 = vpop.eup %1959  ;;  %1735 = vmatprep.subr.msk.mxu1 %vm1005_vm1, %v1958_v57  ;;  %1985 = vtanh.f32 %v736_v22  ;;  %v636_v57 = vadd.f32 %v2441_v39, %v2405_v13 }
 0x132   : > { %v1962_v63 = vpop.eup %1961  ;;  %v2472_v0 = vpop.f32.mrf.mxu0  ;;  %1736 = vmatpush3.xpose.msk.msra.mxu1 %vm1005_vm1, %v1960_v60  ;;  %1987 = vtanh.f32 %v656_v33  ;;  %v711_v60 = vadd.f32 %v2426_v27, %v2441_v39 }
 0x133   : > { %1737 = vmatprep.subr.msk.mxu1 %vm1005_vm1, %v1962_v63  ;;  %v1964_v4 = vpop.eup %1963  ;;  %1989 = vtanh.f32 %v731_v36 }
 0x134   : > { %v2477_v3 = vpop.f32.mrf.mxu0  ;;  %v1966_v6 = vpop.eup %1965  ;;  %1991 = vtanh.f32 %v651_v38 }
 0x135   : > { %v1968_v20 = vpop.eup %1967  ;;  %1993 = vtanh.f32 %v726_v41 }
 0x136   : > { %v2480_v7 = vpop.f32.mrf.mxu0  ;;  %1738 = vmatpush3.xpose.msk.msra.mxu1 %vm1005_vm1, %v1964_v4  ;;  %v1970_v23 = vpop.eup %1969  ;;  %1995 = vtanh.f32 %v646_v43  ;;  %v626_v4 = vadd.f32 %v2441_v39, %v2401_v11 }
 0x137   : > { %1739 = vmatprep.subr.msk.mxu1 %vm1005_vm1, %v1966_v6  ;;  %v1972_v17 = vpop.eup %1971  ;;  %1997 = vtanh.f32 %v721_v45  ;;  %v701_v6 = vadd.f32 %v2422_v25, %v2441_v39 }
 0x138   : > { %v2486_v21 = vpop.f32.mrf.mxu0  ;;  %v1974_v37 = vpop.eup %1973  ;;  %1999 = vtanh.f32 %v641_v49 }
 0x139   : > { %v1976_v18 = vpop.eup %1975  ;;  %2001 = vtanh.f32 %v716_v53 }
 0x13a   : > { %v2489_v24 = vpop.f32.mrf.mxu0  ;;  %1740 = vmatpush3.xpose.msk.msra.mxu1 %vm1005_vm1, %v1968_v20  ;;  %v1978_v31 = vpop.eup %1977  ;;  %2003 = vtanh.f32 %v636_v57  ;;  %v621_v20 = vadd.f32 %v2395_v8, %v2441_v39 }
 0x13b   : > { %1741 = vmatprep.subr.msk.mxu1 %vm1005_vm1, %v1970_v23  ;;  %v1980_v44 = vpop.eup %1979  ;;  %2005 = vtanh.f32 %v711_v60  ;;  %v696_v23 = vadd.f32 %v2441_v39, %v2424_v26 }
 0x13c   : > { %v2495_v35 = vpop.f32.mrf.mxu0  ;;  %v1982_v47 = vpop.eup %1981  ;;  %2007 = vtanh.f32 %v631_v62 }
 0x13d   : > { %v1984_v16 = vpop.eup %1983  ;;  %2009 = vtanh.f32 %v706_v1 }
 0x13e   : > { %v2499_v34 = vpop.f32.mrf.mxu0  ;;  %1742 = vmatpush3.xpose.msk.msra.mxu1 %vm1005_vm1, %v1972_v17  ;;  %v1986_v29 = vpop.eup %1985  ;;  %2011 = vtanh.f32 %v626_v4  ;;  %v616_v17 = vadd.f32 %v2441_v39, %v2397_v9 }
 0x13f   : > { %1743 = vmatprep.subr.msk.mxu1 %vm1005_vm1, %v1974_v37  ;;  %v1988_v58 = vpop.eup %1987  ;;  %2013 = vtanh.f32 %v701_v6 }
 0x140   : > { %v2505_v40 = vpop.f32.mrf.mxu0  ;;  %v1990_v61 = vpop.eup %1989  ;;  %2015 = vtanh.f32 %v621_v20 }
 0x141   : > { %v1992_v13 = vpop.eup %1991  ;;  %2017 = vtanh.f32 %v696_v23  ;;  %v851_v26 = vadd.f32 %v2505_v40, %v2441_v39 }
 0x142   : > { %v2509_v42 = vpop.f32.mrf.mxu0  ;;  %1744 = vmatpush3.xpose.msk.msra.mxu1 %vm1005_vm1, %v1976_v18  ;;  %v1994_v27 = vpop.eup %1993  ;;  %2019 = vtanh.f32 %v616_v17 }
 0x143   : > { %1745 = vmatprep.subr.msk.mxu1 %vm1005_vm1, %v1978_v31  ;;  %v1996_v5 = vpop.eup %1995  ;;  %v846_v45 = vadd.f32 %v2441_v39, %v2509_v42  ;;  %v836_v42 = vadd.f32 %v2441_v39, %v2499_v34 }
 0x144   : > { %v2515_v15 = vpop.f32.mrf.mxu0  ;;  %v1998_v19 = vpop.eup %1997 }
 0x145   : > { %v2000_v11 = vpop.eup %1999 }
 0x146   : > { %v2519_v32 = vpop.f32.mrf.mxu0  ;;  %1746 = vmatpush3.xpose.msk.msra.mxu1 %vm1005_vm1, %v1980_v44  ;;  %v2002_v33 = vpop.eup %2001 }
 0x147   : > { %1747 = vmatprep.subr.msk.mxu1 %vm1005_vm1, %v1982_v47  ;;  %v2004_v37 = vpop.eup %2003 }
 0x148   : > { %v2525_v51 = vpop.f32.mrf.mxu0  ;;  %v2006_v8 = vpop.eup %2005 }
 0x149   : > { %v2008_v41 = vpop.eup %2007 }
 0x14a   : > { %v2529_v55 = vpop.f32.mrf.mxu0  ;;  %1748 = vmatpush3.xpose.msk.msra.mxu1 %vm1005_vm1, %v1984_v16  ;;  %v2010_v43 = vpop.eup %2009  ;;  %v841_v16 = vadd.f32 %v2495_v35, %v2441_v39 }
 0x14b   : > { %1749 = vmatprep.subr.msk.mxu1 %vm1005_vm1, %v1986_v29  ;;  %v2012_v47 = vpop.eup %2011 }
 0x14c   : > { %v2535_v12 = vpop.f32.mrf.mxu0  ;;  %v2014_v49 = vpop.eup %2013 }
 0x14d   : > { %v2016_v53 = vpop.eup %2015 }
 0x14e   : > { %v2539_v30 = vpop.f32.mrf.mxu0  ;;  %1750 = vmatpush3.xpose.msk.msra.mxu1 %vm1005_vm1, %v1988_v58  ;;  %v2018_v57 = vpop.eup %2017 }
 0x14f   : > { %1751 = vmatprep.subr.msk.mxu1 %vm1005_vm1, %v1990_v61  ;;  %v2020_v58 = vpop.eup %2019  ;;  %v831_v61 = vadd.f32 %v2486_v21, %v2441_v39  ;;  %v826_v21 = vadd.f32 %v2441_v39, %v2489_v24 }
 0x150   : > { %v2545_v63 = vpop.f32.mrf.mxu0 }
 0x152   : > { %v2549_v2 = vpop.f32.mrf.mxu0  ;;  %1752 = vmatpush3.xpose.msk.msra.mxu1 %vm1005_vm1, %v1992_v13 }
 0x153   : > { %1753 = vmatprep.subr.msk.mxu1 %vm1005_vm1, %v1994_v27  ;;  %v886_v23 = vadd.f32 %v2441_v39, %v2549_v2  ;;  %v801_v2 = vadd.f32 %v2459_v54, %v2441_v39 }
 0x154   : > { %v2555_v10 = vpop.f32.mrf.mxu0 }
 0x155   : > { %v901_v27 = vadd.f32 %v2555_v10, %v2441_v39  ;;  %v816_v10 = vadd.f32 %v2441_v39, %v2480_v7 }
 0x156   : > { %v2559_v28 = vpop.f32.mrf.mxu0  ;;  %1754 = vmatpush3.xpose.msk.msra.mxu1 %vm1005_vm1, %v1996_v5  ;;  %v821_v5 = vadd.f32 %v2477_v3, %v2441_v39 }
 0x157   : > { %1755 = vmatprep.subr.msk.mxu1 %vm1005_vm1, %v1998_v19  ;;  %v896_v19 = vadd.f32 %v2441_v39, %v2559_v28  ;;  %v811_v28 = vadd.f32 %v2465_v59, %v2441_v39 }
 0x158   : > { %v1908_v22 = vpop.f32.mrf.mxu0 }
 0x159   : > { %v911_v60 = vadd.f32 %v1908_v22, %v2441_v39  ;;  %v891_v22 = vadd.f32 %v2545_v63, %v2441_v39  ;;  %v806_v63 = vadd.f32 %v2441_v39, %v2472_v0 }
 0x15a   : > { %v905_v25 = vpop.f32.mrf.mxu0  ;;  %1756 = vmatpush3.xpose.msk.msra.mxu1 %vm1005_vm1, %v2000_v11 }
 0x15b   : > { %1757 = vmatprep.subr.msk.mxu1 %vm1005_vm1, %v2002_v33  ;;  %v906_v13 = vadd.f32 %v2441_v39, %v905_v25  ;;  %v881_v25 = vadd.f32 %v2535_v12, %v2441_v39  ;;  %v796_v12 = vadd.f32 %v2441_v39, %v2462_v56 }
 0x15c   : > { %v1911_v36 = vpop.f32.mrf.mxu0 }
 0x15d   : > { %v921_v40 = vadd.f32 %v1911_v36, %v2441_v39  ;;  %v876_v36 = vadd.f32 %v2441_v39, %v2539_v30  ;;  %v791_v30 = vadd.f32 %v2453_v50, %v2441_v39 }
 0x15e   : > { %v915_v38 = vpop.f32.mrf.mxu0  ;;  %1758 = vmatpush3.xpose.msk.msra.mxu1 %vm1005_vm1, %v2004_v37 }
 0x15f   : > { %1759 = vmatprep.subr.msk.mxu1 %vm1005_vm1, %v2006_v8  ;;  %v916_v29 = vadd.f32 %v2441_v39, %v915_v38  ;;  %v871_v8 = vadd.f32 %v2525_v51, %v2441_v39  ;;  %v786_v51 = vadd.f32 %v2441_v39, %v2456_v52 }
 0x160   : > { %v1914_v18 = vpop.f32.mrf.mxu0 }
 0x161   : > { %v931_v31 = vadd.f32 %v1914_v18, %v2441_v39 }
 0x162   : > { %v925_v44 = vpop.f32.mrf.mxu0  ;;  %1760 = vmatpush3.xpose.msk.msra.mxu1 %vm1005_vm1, %v2008_v41  ;;  %v861_v41 = vadd.f32 %v2515_v15, %v2441_v39  ;;  %v776_v15 = vadd.f32 %v2441_v39, %v2450_v48 }
 0x163   : > { %2021 = vtanh.f32 %v931_v31  ;;  %v926_v9 = vadd.f32 %v2441_v39, %v925_v44  ;;  %1761 = vmatprep.subr.msk.mxu1 %vm1005_vm1, %v2010_v43  ;;  %v856_v43 = vadd.f32 %v2441_v39, %v2519_v32 }
 0x164   : > { %2023 = vtanh.f32 %v851_v26  ;;  %v866_v26 = vadd.f32 %v2441_v39, %v2529_v55  ;;  %v781_v55 = vadd.f32 %v2447_v46, %v2441_v39 }
 0x165   : > { %2025 = vtanh.f32 %v926_v9 }
 0x166   : > { %1762 = vmatpush3.xpose.msk.msra.mxu1 %vm1005_vm1, %v2012_v47  ;;  %2027 = vtanh.f32 %v846_v45 }
 0x167   : > { %1763 = vmatprep.subr.msk.mxu1 %vm1005_vm1, %v2014_v49  ;;  %2029 = vtanh.f32 %v921_v40  ;;  %v333_v49 = vld [vmem:[%s262_s11] sm:$0xf] }
 0x168   : > { %2031 = vtanh.f32 %v841_v16  ;;  %v335_v16 = vadd.s32 3, %v333_v49  ;;  %vm334_vm2 = vcmp.lt.s32.totalorder %v333_v49, 0 }
 0x169   : > { %2033 = vtanh.f32 %v916_v29  ;;  %v1343_v29 = vlaneseq }
 0x16a   : > { %1764 = vmatpush3.xpose.msk.msra.mxu1 %vm1005_vm1, %v2016_v53  ;;  %2035 = vtanh.f32 %v836_v42  ;;  %v336_v53 = vsel %vm334_vm2, %v335_v16, %v333_v49 }
 0x16b   : > { %1765 = vmatprep.subr.msk.mxu1 %vm1005_vm1, %v2018_v57  ;;  %2037 = vtanh.f32 %v911_v60  ;;  %vm337_vm3 = vcmp.lt.s32.totalorder %v336_v53, 0  ;;  %vm338_vm4 = vcmp.ge.s32.totalorder %v336_v53, 3  ;;  %v2682_v57 = vshrl.u32 %v1343_v29, 7 }
 0x16c   : > { %2039 = vtanh.f32 %v831_v61  ;;  %vm339_vm5 = vmor %vm337_vm3, %vm338_vm4  ;;  %vm1429_vm11 = vcmp.lt.s32.totalorder %v1343_v29, 512 }
 0x16d   : > { %2041 = vtanh.f32 %v906_v13  ;;  %v340_v60 = vsel %vm339_vm5, 0, %v336_v53 }
 0x16e   : > { %1766 = vmatpush3.xpose.msk.msra.mxu1 %vm1005_vm1, %v2020_v58  ;;  %2043 = vtanh.f32 %v826_v21  ;;  %v1347_v58 = vsub.s32 0, %v2682_v57 }
 0x16f   : > { %2045 = vtanh.f32 %v901_v27 }
 0x170   : > { %v2022_v35 = vpop.eup %2021  ;;  %2047 = vtanh.f32 %v821_v5  ;;  %v1348_v13 = vrot.slane %v340_v60, %v1347_v58 }
 0x171   : > { %v2024_v62 = vpop.eup %2023  ;;  %1768 = vmatmul.mubr.msk.f32.vlgmr.msra.gmra.mxu1 %vm1005_vm1, %v2410_v14  ;;  %1769 = vmatprep.subr.msk.mxu1 %vm1005_vm1, %v2022_v35  ;;  %2049 = vtanh.f32 %v896_v19 }
 0x172   : > { %v2026_v34 = vpop.eup %2025  ;;  %1770 = vmatpush3.xpose.msk.msra.mxu1 %vm1005_vm1, %v2024_v62  ;;  %1801 = vmatprep.mubr.msk.f32.mxu1 %vm1005_vm1, %v2410_v14  ;;  %2051 = vtanh.f32 %v816_v10  ;;  %v1003_v62 = vpop.permute.xlu0 %1002  ;;  %vm1361_vm7 = vcmp.eq.s32.totalorder %v2682_v57, %v1348_v13 }
 0x173   : > { %1771 = vmatprep.subr.msk.mxu1 %vm1005_vm1, %v2026_v34  ;;  %v2028_v1 = vpop.eup %2027  ;;  %2053 = vtanh.f32 %v891_v22 }
 0x174   : > { %v2030_v4 = vpop.eup %2029  ;;  %2055 = vtanh.f32 %v811_v28 }
 0x175   : > { %v2032_v6 = vpop.eup %2031  ;;  %2057 = vtanh.f32 %v886_v23 }
 0x176   : > { %1772 = vmatpush3.xpose.msk.msra.mxu1 %vm1005_vm1, %v2028_v1  ;;  %v2034_v24 = vpop.eup %2033  ;;  %2059 = vtanh.f32 %v806_v63 }
 0x177   : > { %1773 = vmatprep.subr.msk.mxu1 %vm1005_vm1, %v2030_v4  ;;  %v2036_v20 = vpop.eup %2035  ;;  %2061 = vtanh.f32 %v881_v25 }
 0x178   : > { %v2038_v3 = vpop.eup %2037  ;;  %2063 = vtanh.f32 %v801_v2 }
 0x179   : > { %v2040_v11 = vpop.eup %2039  ;;  %2065 = vtanh.f32 %v876_v36 }
 0x17a   : > { %1774 = vmatpush3.xpose.msk.msra.mxu1 %vm1005_vm1, %v2032_v6  ;;  %v2042_v7 = vpop.eup %2041  ;;  %2067 = vtanh.f32 %v796_v12  ;;  %v1355_v6 = vsub.s32 2, %v2682_v57 }
 0x17b   : > { %1775 = vmatprep.subr.msk.mxu1 %vm1005_vm1, %v2034_v24  ;;  %v2044_v33 = vpop.eup %2043  ;;  %2069 = vtanh.f32 %v871_v8  ;;  %v1359_v24 = vsub.s32 3, %v2682_v57 }
 0x17c   : > { %v2046_v59 = vpop.eup %2045  ;;  %2071 = vtanh.f32 %v791_v30 }
 0x17d   : > { %v2048_v17 = vpop.eup %2047  ;;  %2073 = vtanh.f32 %v866_v26 }
 0x17e   : > { %1776 = vmatpush3.xpose.msk.msra.mxu1 %vm1005_vm1, %v2036_v20  ;;  %v2050_v0 = vpop.eup %2049  ;;  %2075 = vtanh.f32 %v786_v51  ;;  %v1356_v20 = vrot.slane %v340_v60, %v1355_v6 }
 0x17f   : > { %1777 = vmatprep.subr.msk.mxu1 %vm1005_vm1, %v2038_v3  ;;  %v2052_v37 = vpop.eup %2051  ;;  %2077 = vtanh.f32 %v861_v41  ;;  %v1360_v3 = vrot.slane %v340_v60, %v1359_v24 }
 0x180   : > { %v2054_v54 = vpop.eup %2053  ;;  %2079 = vtanh.f32 %v781_v55  ;;  %vm1363_vm9 = vcmp.eq.s32.totalorder %v2682_v57, %v1356_v20 }
 0x181   : > { %v2056_v38 = vpop.eup %2055  ;;  %2081 = vtanh.f32 %v856_v43  ;;  %vm1364_vm10 = vcmp.eq.s32.totalorder %v2682_v57, %v1360_v3 }
 0x182   : > { %1778 = vmatpush3.xpose.msk.msra.mxu1 %vm1005_vm1, %v2040_v11  ;;  %v2058_v56 = vpop.eup %2057  ;;  %2083 = vtanh.f32 %v776_v15 }
 0x183   : > { %1779 = vmatprep.subr.msk.mxu1 %vm1005_vm1, %v2042_v7  ;;  %v2060_v18 = vpop.eup %2059 }
 0x184   : > { %v2062_v50 = vpop.eup %2061 }
 0x185   : > { %v2064_v31 = vpop.eup %2063 }
 0x186   : > { %1780 = vmatpush3.xpose.msk.msra.mxu1 %vm1005_vm1, %v2044_v33  ;;  %v2066_v52 = vpop.eup %2065 }
 0x187   : > { %1781 = vmatprep.subr.msk.mxu1 %vm1005_vm1, %v2046_v59  ;;  %v2068_v44 = vpop.eup %2067 }
 0x188   : > { %v2070_v9 = vpop.eup %2069 }
 0x189   : > { %v2072_v46 = vpop.eup %2071 }
 0x18a   : > { %1782 = vmatpush3.xpose.msk.msra.mxu1 %vm1005_vm1, %v2048_v17  ;;  %v2074_v32 = vpop.eup %2073 }
 0x18b   : > { %1783 = vmatprep.subr.msk.mxu1 %vm1005_vm1, %v2050_v0  ;;  %v2076_v45 = vpop.eup %2075 }
 0x18c   : > { %v2078_v47 = vpop.eup %2077 }
 0x18d   : > { %v2080_v39 = vpop.eup %2079 }
 0x18e   : > { %1784 = vmatpush3.xpose.msk.msra.mxu1 %vm1005_vm1, %v2052_v37  ;;  %v2082_v48 = vpop.eup %2081 }
 0x18f   : > { %1785 = vmatprep.subr.msk.mxu1 %vm1005_vm1, %v2054_v54  ;;  %v2084_v40 = vpop.eup %2083 }
 0x192   : > { %1786 = vmatpush3.xpose.msk.msra.mxu1 %vm1005_vm1, %v2056_v38 }
 0x193   : > { %1787 = vmatprep.subr.msk.mxu1 %vm1005_vm1, %v2058_v56  ;;  %v2148_v56 = vmov 1966171168  }
 0x194   : > { %v1405_v51 = vunpack.c.l.s4 %v2148_v56 }
 0x196   : > { %1788 = vmatpush3.xpose.msk.msra.mxu1 %vm1005_vm1, %v2060_v18 }
 0x197   : > { %1789 = vmatprep.subr.msk.mxu1 %vm1005_vm1, %v2062_v50 }
 0x19a   : > { %1790 = vmatpush3.xpose.msk.msra.mxu1 %vm1005_vm1, %v2064_v31 }
 0x19b   : > { %1791 = vmatprep.subr.msk.mxu1 %vm1005_vm1, %v2066_v52  ;;  %v1406_v52 = vunpack.c.0.s8 %v1405_v51 }
 0x19e   : > { %1792 = vmatpush3.xpose.msk.msra.mxu1 %vm1005_vm1, %v2068_v44 }
 0x19f   : > { %1793 = vmatprep.subr.msk.mxu1 %vm1005_vm1, %v2070_v9 }
 0x1a2   : > { %1794 = vmatpush3.xpose.msk.msra.mxu1 %vm1005_vm1, %v2072_v46 }
 0x1a3   : > { %1795 = vmatprep.subr.msk.mxu1 %vm1005_vm1, %v2074_v32 }
 0x1a6   : > { %1796 = vmatpush3.xpose.msk.msra.mxu1 %vm1005_vm1, %v2076_v45  ;;  %v1409_v45 = vsub.s32 %v1406_v52, %v2682_v57 }
 0x1a7   : > { %1797 = vmatprep.subr.msk.mxu1 %vm1005_vm1, %v2078_v47 }
 0x1aa   : > { %1798 = vmatpush3.xpose.msk.msra.mxu1 %vm1005_vm1, %v2080_v39 }
 0x1ab   : > { %1799 = vmatprep.subr.msk.mxu1 %vm1005_vm1, %v2082_v48 }
 0x1ae   : > { %1800 = vmatpush3.xpose.msk.msra.mxu1 %vm1005_vm1, %v2084_v40 }
 0x1b1   : > { %1802 = vmatmul.mubr.msk.f32.vlgmr.msra.gmra.mxu1 %vm1005_vm1, %v2410_v14  ;;  %v1351_v14 = vsub.s32 1, %v2682_v57 }
 0x1b3   : > { %v1352_v61 = vrot.slane %v340_v60, %v1351_v14 }
 0x1b5   : > { %vm1362_vm6 = vcmp.eq.s32.totalorder %v2682_v57, %v1352_v61 }
 0x231   : > { %v1267_v42 = vpop.f32.mrf.mxu1 }
 0x232   : > { %v1268_v21 = vadd.f32 %v1267_v42, %v1003_v62 }
 0x233   : > { %v1269_v35 = vpop.f32.mrf.mxu1 }
 0x234   : > { %v1270_v34 = vadd.f32 %v1269_v35, %v1003_v62  ;;  %v1365_v27 = vsel %vm1361_vm7, %v1268_v21, 0.0 }
 0x235   : > { %v1370_v5 = vsel %vm1369_vm8, %v1365_v27, 0.0 }
 0x236   : > { %v1366_v1 = vsel %vm1362_vm6, %v1270_v34, 0.0  ;;  %v1371_v10 = vrot.slane %v1370_v5, 4 }
 0x237   : > { %v1377_v4 = vsel %vm1369_vm8, %v1366_v1, 0.0 }
 0x238   : > { %v1378_v19 = vrot.slane %v1377_v4, 4  ;;  %v1372_v28 = vadd.f32 %v1371_v10, %v1370_v5 }
 0x23a   : > { %v1379_v22 = vadd.f32 %v1378_v19, %v1377_v4  ;;  %v1373_v33 = vrot.slane %v1372_v28, 2 }
 0x23c   : > { %v1380_v23 = vrot.slane %v1379_v22, 2  ;;  %v1374_v37 = vadd.f32 %v1373_v33, %v1372_v28 }
 0x23e   : > { %v1381_v17 = vadd.f32 %v1380_v23, %v1379_v22  ;;  %v1375_v18 = vrot.slane %v1374_v37, 1 }
 0x240   : > { %v1382_v30 = vrot.slane %v1381_v17, 1  ;;  %v1376_v15 = vadd.f32 %v1375_v18, %v1374_v37 }
 0x242   : > { %v1383_v55 = vadd.f32 %v1382_v30, %v1381_v17 }
 0x244   : > { %v1402_v9 = vcombine.low %v1376_v15, %v1383_v55 }
 0x246   : > { %v1410_v39 = vrot.slane %v1402_v9, %v1409_v45 }
 0x271   : > { %v1338_v11 = vpop.f32.mrf.mxu1 }
 0x272   : > { %v1339_v7 = vadd.f32 %v1338_v11, %v1003_v62 }
 0x273   : > { %v1340_v63 = vpop.f32.mrf.mxu1 }
 0x274   : > { %v1367_v25 = vsel %vm1363_vm9, %v1339_v7, 0.0  ;;  %v1341_v59 = vadd.f32 %v1340_v63, %v1003_v62 }
 0x275   : > { %v1384_v2 = vsel %vm1369_vm8, %v1367_v25, 0.0 }
 0x276   : > { %v1385_v36 = vrot.slane %v1384_v2, 4  ;;  %v1368_v0 = vsel %vm1364_vm10, %v1341_v59, 0.0 }
 0x277   : > { %v1391_v12 = vsel %vm1369_vm8, %v1368_v0, 0.0 }
 0x278   : > { %v1386_v8 = vadd.f32 %v1385_v36, %v1384_v2  ;;  %v1392_v54 = vrot.slane %v1391_v12, 4 }
 0x27a   : > { %v1387_v38 = vrot.slane %v1386_v8, 2  ;;  %v1393_v26 = vadd.f32 %v1392_v54, %v1391_v12 }
 0x27c   : > { %v1388_v41 = vadd.f32 %v1387_v38, %v1386_v8  ;;  %v1394_v50 = vrot.slane %v1393_v26, 2 }
 0x27e   : > { %v1389_v31 = vrot.slane %v1388_v41, 1  ;;  %v1395_v43 = vadd.f32 %v1394_v50, %v1393_v26 }
 0x280   : > { %v1396_v44 = vrot.slane %v1395_v43, 1  ;;  %v1390_v46 = vadd.f32 %v1389_v31, %v1388_v41 }
 0x282   : > { %v1397_v32 = vadd.f32 %v1396_v44, %v1395_v43 }
 0x284   : > { %v1403_v47 = vcombine.low %v1390_v46, %v1397_v32 }
 0x286   : > { %v1417_v48 = vrot.slane %v1403_v47, %v1409_v45 }
 0x288   : > { %v1418_v40 = vcombine.low %v1410_v39, %v1417_v48 }
 0x28a   : > { %v1425_v49 = vrot.slane %v1418_v40, %v1409_v45 }
 0x28c   : > { %1431 = vst.msk [vmem:[%s258_s14] sm:$0xf] %vm1429_vm11, %v1425_v49 }
 0x28d   : > { %2098 = shalt.err (!%p2095_p4)
}
 0x28e   : > { %s2099_s9 = scalar_lea.hbm %s1445_s18, 64  ;;  %s2103_s11 = scalar_lea.hbm %s2738_s6, 128 }
 0x28f   : > { %p2100_p7 = scmp.ne.s32.totalorder %s1445_s18, %s2099_s9  ;;  %p2104_p10 = scmp.lt.s32.totalorder %s1445_s18, %s2738_s6 }
 0x290   : > { %p2105_p11 = scmp.lt.s32.totalorder %s2103_s11, %s2099_s9 }
 0x291   : > { %p2101_p8 = pnand %p2100_p7, %p2223_p5 }
 0x292   : > { %p2106_p12 = por %p2105_p11, %p2104_p10 }
 0x293   : > { %p2102_p9 = pneg %p2101_p8 }
 0x295   : > { %p2107_p13 = pnand %p2106_p12, %p2102_p9 }
 0x297   : > { %2110 = shalt.err (!%p2107_p13)
}
 0x298   : > { %1915 = dma.vmem_to_hbm [thread:$0]  (%p2223_p5), %s1448_s15, 64, %s1445_s18, %s1433_s19  }
 0x299 PF: > { %p1921_p0 = scmp.ge.s32.totalorder %s2145_s24, 2  ;;  %s1459_s14 = sand.u32 1, %s2133_s21  }
 0x29a   : > { %s1460_s16 = scalar_lea.sflag [#allocation3], %s1459_s14 }
 0x29b   : > { %p1918_p1 = pnand %p1921_p0, %p2227_p6 }
 0x29d   : > { %p1919_p2 = pneg %p1918_p1 }
 0x29f   : > { %2128 = dma.done.wait (%p1919_p2), %s1460_s16, 64  }
 0x2a0   : > { %2130 = vsyncadd (%p1919_p2), %s1460_s16, 4294967232  ;;  %p16_p3 = scmp.ge.s32.totalorder %s2210_s27, 4   ;;  %s2741_s21 = smov %s2137_s22 }
 0x2a1   : > { %s2742_s22 = smov %s2141_s23  ;;  %s2743_s23 = smov %s2221_s30 }
 0x2a2   : > { %s2744_s24 = smov %s2210_s27  ;;  %18 = sbr.rel (!%p16_p3) target bundleno = 3 (0x3), region = 82 }
 0x2a7   :  { %1465 = vsyncpa [#allocation3], 1 }
 0x2a8   :  { %1467 = vsyncpa [#allocation3 + $0x1], 1 }

// kernel: tpu_custom_call.1
= control target key start
LH: loop header
LB: loop body
LE: loop exit
PB: predicated region body
PF: predicated region fallthrough
CT: control target
= control target key end

     0   :  { %11 = vsyncpa [#allocation3], 0  ;;  %s2732_s0 = inlined_call_operand.vmem [shape: s32[2,1,512], index: 0, kind: input, shape index: {}]   ;;  %s2733_s1 = inlined_call_operand.vmem [shape: f32[1024,64], index: 1, kind: input, shape index: {}]   ;;  %s2734_s2 = inlined_call_operand.vmem [shape: f32[64,96], index: 2, kind: input, shape index: {}]   ;;  %s2735_s3 = inlined_call_operand.vmem [shape: f32[1,96], index: 3, kind: input, shape index: {}]   ;;  %s2736_s4 = inlined_call_operand.vmem [shape: f32[3,96], index: 4, kind: input, shape index: {}]   ;;  %s2737_s5 = inlined_call_operand.vmem [shape: f32[3,1], index: 5, kind: input, shape index: {}]   ;;  %s2738_s6 = inlined_call_operand.hbm [shape: f32[2,1,512], index: 6, kind: output, shape index: {}]  }
   0x1   :  { %13 = vsyncpa [#allocation3 + $0x1], 0  ;;  %s2185_s21 = smov 0   ;;  %s2187_s22 = smov 0  }
   0x2   :  { %s2189_s23 = smov 0   ;;  %s2191_s24 = smov 0  }
   0x3 LB: > { %s2206_s25 = sadd.s32 4294967295, %s2145_s24   ;;  %s1518_s26 = sadd.s32 4294967294, %s2145_s24   ;;  %s2145_s24 = sphi %s2191_s24, %s2744_s24   ;;  %s2141_s23 = sphi %s2189_s23, %s2743_s23   ;;  %s2137_s22 = sphi %s2187_s22, %s2742_s22   ;;  %s2133_s21 = sphi %s2185_s21, %s2741_s21  }
   0x4   : > { %s2210_s27 = sadd.s32 1, %s2145_s24   ;;  %s162_s28 = sadd.s32 1, %s2141_s23 }
   0x5   : > { %s159_s29 = ssub.s32 %s2145_s24, %s2210_s27  ;;  %p172_p0 = scmp.ne.s32.totalorder %s2141_s23, %s2137_s22 }
   0x6   : > { %p160_p1 = scmp.eq.s32.totalorder %s159_s29, 0  ;;  %p173_p2 = scmp.eq.s32.totalorder %s2206_s25, 1 }
   0x7   : > { %p178_p3 = scmp.ne.s32.totalorder %s2137_s22, %s2133_s21  ;;  %p179_p4 = scmp.eq.s32.totalorder %s1518_s26, 1 }
   0x8   : > { %s2221_s30 = scalar_select %p160_p1, %s2141_s23, %s162_s28  }
   0x9   : > { %p2223_p5 = por %p173_p2, %p172_p0  ;;  %p2227_p6 = por %p179_p4, %p178_p3 }
   0xa   : > { %p1521_p7 = scmp.ge.s32.totalorder %s2145_s24, 1  ;;  %p225_p8 = scmp.lt.s32.totalorder %s2145_s24, 3 }
   0xc   : > { %p226_p9 = pnand %p1521_p7, %p225_p8 }
   0xd   : > { %s2240_s13 = sshll.u32 (!%p226_p9), %s2206_s25, 6  ;;  %p259_p11 = scmp.lt.s32.totalorder (!%p226_p9), %s2206_s25, 1 }
   0xe   : > { %229 = sbr.rel (%p226_p9) target bundleno = 665 (0x299), region = 44  ;;  %p264_p10 = scmp.lt.s32.totalorder (!%p226_p9), %s2240_s13, 127 }
   0xf   : > { %s1445_s18 = scalar_lea.hbm (!%p226_p9), %s2738_s6, %s2240_s13  ;;  %s2149_s26 = smov (!%p226_p9), [#allocation2]  }
  0x10   : > { %s2089_s28 = sshll.u32 (!%p226_p9), %s2149_s26, 4  ;;  %s2090_s28 = int_to_ptr.vmem [resolvable:$false] %s2089_s28 }
  0x13   : > { %v348_v0 = vld [vmem:[%s2734_s2 + $0x38] sm:$0xff]  ;;  %v347_v1 = vld [vmem:[%s2734_s2 + $0x30] sm:$0xff]  ;;  %v346_v2 = vld [vmem:[%s2734_s2 + $0x28] sm:$0xff]  ;;  %s265_s16 = scalar_select %p264_p10, %s2240_s13, 127  ;;  %vm356_vm0 = vcmask 523264   ;;  %vm1005_vm1 = vcmask 785408  }
  0x14   : > { %1803 = vmatprep.subr.mxu0 %v348_v0  ;;  %v345_v3 = vld [vmem:[%s2734_s2 + $0x20] sm:$0xff]  ;;  %v344_v4 = vld [vmem:[%s2734_s2 + $0x18] sm:$0xff]  ;;  %v343_v6 = vld [vmem:[%s2734_s2 + $0x10] sm:$0xff]  ;;  %s2746_s25 = smov (!%p259_p11, %s2206_s25), 1  ;;  %vm1369_vm8 = vcmask 1042432  }
  0x15   : > { %1804 = vmatpush3.msra.mxu0 %v348_v0  ;;  %s1525_s19 = sshll.u32 %s265_s16, 3  ;;  %v342_v7 = vld [vmem:[%s2734_s2 + $0x8] sm:$0xff]  ;;  %v341_v8 = vld [vmem:[%s2734_s2] sm:$0xff]  ;;  %s1523_s29 = sshll.u32 %s2746_s25, 2 }
  0x16   : > { %1805 = vmatprep.subr.mxu0 %v347_v1  ;;  %s2256_s9 = scalar_lea.vmem %s2733_s1, %s1525_s19  ;;  %s262_s11 = scalar_lea.vmem %s2732_s0, %s1523_s29 }
  0x17   : > { %1806 = vmatpush3.msra.mxu0 %v347_v1  ;;  %v269_v5 = vld [vmem:[%s2256_s9] sm:$0xff]  ;;  %v270_v9 = vld [vmem:[%s2256_s9 + $0x8] sm:$0xff]  ;;  %v271_v10 = vld [vmem:[%s2256_s9 + $0x10] sm:$0xff]  ;;  %s256_s25 = sand.u32 1, %s2137_s22   ;;  %s2091_s29 = scalar_lea.vmem %s2090_s28, 128 }
  0x18   : > { %1807 = vmatprep.subr.mxu0 %v346_v2  ;;  %1819 = vmatprep.mubr.msk.f32.mxu0 %vm356_vm0, %v269_v5  ;;  %v272_v11 = vld [vmem:[%s2256_s9 + $0x18] sm:$0xff]  ;;  %v273_v12 = vld [vmem:[%s2256_s9 + $0x20] sm:$0xff]  ;;  %v274_v13 = vld [vmem:[%s2256_s9 + $0x28] sm:$0xff]  ;;  %s1522_s12 = sshll.u32 %s256_s25, 2  ;;  %s1433_s19 = scalar_lea.sflag [#allocation3], %s256_s25 }
  0x19   : > { %1808 = vmatpush3.msra.mxu0 %v346_v2  ;;  %v275_v14 = vld [vmem:[%s2256_s9 + $0x30] sm:$0xff]  ;;  %v276_v15 = vld [vmem:[%s2256_s9 + $0x38] sm:$0xff]  ;;  %v277_v16 = vld [vmem:[%s2256_s9 + $0x40] sm:$0xff]  ;;  %s258_s14 = scalar_lea.vmem [#allocation2], %s1522_s12 }
  0x1a   : > { %1809 = vmatprep.subr.mxu0 %v345_v3  ;;  %v278_v17 = vld [vmem:[%s2256_s9 + $0x48] sm:$0xff]  ;;  %v279_v18 = vld [vmem:[%s2256_s9 + $0x50] sm:$0xff]  ;;  %v280_v19 = vld [vmem:[%s2256_s9 + $0x58] sm:$0xff]  ;;  %s1447_s15 = sshll.u32 %s258_s14, 4  ;;  %s1448_s15 = int_to_ptr.vmem [resolvable:$true] %s1447_s15 }
  0x1b   : > { %1810 = vmatpush3.msra.mxu0 %v345_v3  ;;  %v281_v20 = vld [vmem:[%s2256_s9 + $0x60] sm:$0xff]  ;;  %v282_v21 = vld [vmem:[%s2256_s9 + $0x68] sm:$0xff]  ;;  %v283_v22 = vld [vmem:[%s2256_s9 + $0x70] sm:$0xff]  ;;  %s2085_s20 = scalar_lea.vmem %s1448_s15, 64  ;;  %p2092_p1 = scmp.lt.s32.totalorder %s1448_s15, %s2090_s28 }
  0x1c   : > { %1811 = vmatprep.subr.mxu0 %v344_v4  ;;  %v284_v23 = vld [vmem:[%s2256_s9 + $0x78] sm:$0xff]  ;;  %v285_v24 = vld [vmem:[%s2256_s9 + $0x80] sm:$0xff]  ;;  %v286_v25 = vld [vmem:[%s2256_s9 + $0x88] sm:$0xff]  ;;  %p2086_p12 = scmp.ne.s32.totalorder %s1448_s15, %s2085_s20  ;;  %p2093_p2 = scmp.lt.s32.totalorder %s2091_s29, %s2085_s20 }
  0x1d   : > { %1812 = vmatpush3.msra.mxu0 %v344_v4  ;;  %v287_v26 = vld [vmem:[%s2256_s9 + $0x90] sm:$0xff]  ;;  %v288_v27 = vld [vmem:[%s2256_s9 + $0x98] sm:$0xff]  ;;  %v289_v28 = vld [vmem:[%s2256_s9 + $0xa0] sm:$0xff] }
  0x1e   : > { %1813 = vmatprep.subr.mxu0 %v343_v6  ;;  %v290_v29 = vld [vmem:[%s2256_s9 + $0xa8] sm:$0xff]  ;;  %v291_v30 = vld [vmem:[%s2256_s9 + $0xb0] sm:$0xff]  ;;  %v292_v31 = vld [vmem:[%s2256_s9 + $0xb8] sm:$0xff]  ;;  %p2087_p13 = pnand %p2086_p12, %p2223_p5  ;;  %p2094_p3 = por %p2093_p2, %p2092_p1 }
  0x1f   : > { %1814 = vmatpush3.msra.mxu0 %v343_v6  ;;  %v293_v32 = vld [vmem:[%s2256_s9 + $0xc0] sm:$0xff]  ;;  %v294_v33 = vld [vmem:[%s2256_s9 + $0xc8] sm:$0xff]  ;;  %v295_v34 = vld [vmem:[%s2256_s9 + $0xd0] sm:$0xff] }
  0x20   : > { %1815 = vmatprep.subr.mxu0 %v342_v7  ;;  %v296_v35 = vld [vmem:[%s2256_s9 + $0xd8] sm:$0xff]  ;;  %v297_v36 = vld [vmem:[%s2256_s9 + $0xe0] sm:$0xff]  ;;  %v298_v37 = vld [vmem:[%s2256_s9 + $0xe8] sm:$0xff]  ;;  %p2088_p0 = pneg %p2087_p13 }
  0x21   : > { %1816 = vmatpush3.msra.mxu0 %v342_v7  ;;  %v299_v38 = vld [vmem:[%s2256_s9 + $0xf0] sm:$0xff]  ;;  %v300_v39 = vld [vmem:[%s2256_s9 + $0xf8] sm:$0xff]  ;;  %v301_v40 = vld [vmem:[%s2256_s9 + $0x100] sm:$0xff] }
  0x22   : > { %1817 = vmatprep.subr.mxu0 %v341_v8  ;;  %v302_v41 = vld [vmem:[%s2256_s9 + $0x108] sm:$0xff]  ;;  %v303_v42 = vld [vmem:[%s2256_s9 + $0x110] sm:$0xff]  ;;  %v304_v43 = vld [vmem:[%s2256_s9 + $0x118] sm:$0xff]  ;;  %p2095_p4 = pnand %p2094_p3, %p2088_p0 }
  0x23   : > { %1818 = vmatpush3.msra.mxu0 %v341_v8  ;;  %v305_v44 = vld [vmem:[%s2256_s9 + $0x120] sm:$0xff]  ;;  %v306_v45 = vld [vmem:[%s2256_s9 + $0x128] sm:$0xff]  ;;  %v307_v46 = vld [vmem:[%s2256_s9 + $0x130] sm:$0xff] }
  0x24   : > { %1820 = vmatmul.mubr.msk.f32.vlgmr.msra.gmra.mxu0 %vm356_vm0, %v270_v9  ;;  %v308_v47 = vld [vmem:[%s2256_s9 + $0x138] sm:$0xff]  ;;  %v309_v48 = vld [vmem:[%s2256_s9 + $0x140] sm:$0xff]  ;;  %v310_v49 = vld [vmem:[%s2256_s9 + $0x148] sm:$0xff] }
  0x25   : > { %1822 = vmatprep.mubr.msk.f32.mxu0 %vm356_vm0, %v271_v10  ;;  %v311_v50 = vld [vmem:[%s2256_s9 + $0x150] sm:$0xff]  ;;  %v312_v51 = vld [vmem:[%s2256_s9 + $0x158] sm:$0xff]  ;;  %v313_v52 = vld [vmem:[%s2256_s9 + $0x160] sm:$0xff] }
  0x26   : > { %v314_v53 = vld [vmem:[%s2256_s9 + $0x168] sm:$0xff]  ;;  %v315_v54 = vld [vmem:[%s2256_s9 + $0x170] sm:$0xff]  ;;  %v316_v55 = vld [vmem:[%s2256_s9 + $0x178] sm:$0xff] }
  0x27   : > { %v317_v56 = vld [vmem:[%s2256_s9 + $0x180] sm:$0xff]  ;;  %v318_v57 = vld [vmem:[%s2256_s9 + $0x188] sm:$0xff]  ;;  %v319_v58 = vld [vmem:[%s2256_s9 + $0x190] sm:$0xff] }
  0x28   : > { %1823 = vmatmul.mubr.msk.f32.gmra.mxu0 %vm356_vm0, %v272_v11  ;;  %v320_v59 = vld [vmem:[%s2256_s9 + $0x198] sm:$0xff]  ;;  %v321_v60 = vld [vmem:[%s2256_s9 + $0x1a0] sm:$0xff]  ;;  %v322_v61 = vld [vmem:[%s2256_s9 + $0x1a8] sm:$0xff] }
  0x29   : > { %1825 = vmatprep.mubr.msk.f32.mxu0 %vm356_vm0, %v273_v12  ;;  %v323_v62 = vld [vmem:[%s2256_s9 + $0x1b0] sm:$0xff]  ;;  %v324_v63 = vld [vmem:[%s2256_s9 + $0x1b8] sm:$0xff]  ;;  %v325_v0 = vld [vmem:[%s2256_s9 + $0x1c0] sm:$0xff] }
  0x2a   : > { %v326_v1 = vld [vmem:[%s2256_s9 + $0x1c8] sm:$0xff]  ;;  %v327_v2 = vld [vmem:[%s2256_s9 + $0x1d0] sm:$0xff]  ;;  %v328_v3 = vld [vmem:[%s2256_s9 + $0x1d8] sm:$0xff] }
  0x2b   : > { %v329_v4 = vld [vmem:[%s2256_s9 + $0x1e0] sm:$0xff]  ;;  %v330_v5 = vld [vmem:[%s2256_s9 + $0x1e8] sm:$0xff]  ;;  %v331_v6 = vld [vmem:[%s2256_s9 + $0x1f0] sm:$0xff] }
  0x2c   : > { %1826 = vmatmul.mubr.msk.f32.gmra.mxu0 %vm356_vm0, %v274_v13  ;;  %v332_v7 = vld [vmem:[%s2256_s9 + $0x1f8] sm:$0xff] }
  0x2d   : > { %1828 = vmatprep.mubr.msk.f32.mxu0 %vm356_vm0, %v275_v14  ;;  %v2410_v14 = vld [vmem:[%s2736_s4] sm:$0x7] }
  0x2e   : > { %1767 = vmatprep.mubr.msk.f32.mxu1 %vm1005_vm1, %v2410_v14 }
  0x30   : > { %1829 = vmatmul.mubr.msk.f32.gmra.mxu0 %vm356_vm0, %v276_v15 }
  0x31   : > { %1831 = vmatprep.mubr.msk.f32.mxu0 %vm356_vm0, %v277_v16 }
  0x34   : > { %1832 = vmatmul.mubr.msk.f32.gmra.mxu0 %vm356_vm0, %v278_v17 }
  0x35   : > { %1834 = vmatprep.mubr.msk.f32.mxu0 %vm356_vm0, %v279_v18 }
  0x38   : > { %1835 = vmatmul.mubr.msk.f32.gmra.mxu0 %vm356_vm0, %v280_v19 }
  0x39   : > { %1837 = vmatprep.mubr.msk.f32.mxu0 %vm356_vm0, %v281_v20 }
  0x3c   : > { %1838 = vmatmul.mubr.msk.f32.gmra.mxu0 %vm356_vm0, %v282_v21 }
  0x3d   : > { %1840 = vmatprep.mubr.msk.f32.mxu0 %vm356_vm0, %v283_v22 }
  0x40   : > { %1841 = vmatmul.mubr.msk.f32.gmra.mxu0 %vm356_vm0, %v284_v23 }
  0x41   : > { %1843 = vmatprep.mubr.msk.f32.mxu0 %vm356_vm0, %v285_v24 }
  0x44   : > { %1844 = vmatmul.mubr.msk.f32.gmra.mxu0 %vm356_vm0, %v286_v25 }
  0x45   : > { %1846 = vmatprep.mubr.msk.f32.mxu0 %vm356_vm0, %v287_v26 }
  0x48   : > { %1847 = vmatmul.mubr.msk.f32.gmra.mxu0 %vm356_vm0, %v288_v27 }
  0x49   : > { %1849 = vmatprep.mubr.msk.f32.mxu0 %vm356_vm0, %v289_v28 }
  0x4c   : > { %1850 = vmatmul.mubr.msk.f32.gmra.mxu0 %vm356_vm0, %v290_v29 }
  0x4d   : > { %1852 = vmatprep.mubr.msk.f32.mxu0 %vm356_vm0, %v291_v30 }
  0x50   : > { %1853 = vmatmul.mubr.msk.f32.gmra.mxu0 %vm356_vm0, %v292_v31 }
  0x51   : > { %1855 = vmatprep.mubr.msk.f32.mxu0 %vm356_vm0, %v293_v32 }
  0x54   : > { %1856 = vmatmul.mubr.msk.f32.gmra.mxu0 %vm356_vm0, %v294_v33 }
  0x55   : > { %1858 = vmatprep.mubr.msk.f32.mxu0 %vm356_vm0, %v295_v34 }
  0x58   : > { %1859 = vmatmul.mubr.msk.f32.gmra.mxu0 %vm356_vm0, %v296_v35 }
  0x59   : > { %1861 = vmatprep.mubr.msk.f32.mxu0 %vm356_vm0, %v297_v36 }
  0x5c   : > { %1862 = vmatmul.mubr.msk.f32.gmra.mxu0 %vm356_vm0, %v298_v37 }
  0x5d   : > { %1864 = vmatprep.mubr.msk.f32.mxu0 %vm356_vm0, %v299_v38 }
  0x60   : > { %1865 = vmatmul.mubr.msk.f32.gmra.mxu0 %vm356_vm0, %v300_v39  ;;  %v2441_v39 = vld [vmem:[%s2735_s3] ss:$0 sm:$0xff] }
  0x61   : > { %1867 = vmatprep.mubr.msk.f32.mxu0 %vm356_vm0, %v301_v40 }
  0x64   : > { %1868 = vmatmul.mubr.msk.f32.gmra.mxu0 %vm356_vm0, %v302_v41 }
  0x65   : > { %1870 = vmatprep.mubr.msk.f32.mxu0 %vm356_vm0, %v303_v42 }
  0x68   : > { %1871 = vmatmul.mubr.msk.f32.gmra.mxu0 %vm356_vm0, %v304_v43 }
  0x69   : > { %1873 = vmatprep.mubr.msk.f32.mxu0 %vm356_vm0, %v305_v44 }
  0x6c   : > { %1874 = vmatmul.mubr.msk.f32.gmra.mxu0 %vm356_vm0, %v306_v45 }
  0x6d   : > { %1876 = vmatprep.mubr.msk.f32.mxu0 %vm356_vm0, %v307_v46 }
  0x70   : > { %1877 = vmatmul.mubr.msk.f32.gmra.mxu0 %vm356_vm0, %v308_v47 }
  0x71   : > { %1879 = vmatprep.mubr.msk.f32.mxu0 %vm356_vm0, %v309_v48 }
  0x74   : > { %1880 = vmatmul.mubr.msk.f32.gmra.mxu0 %vm356_vm0, %v310_v49 }
  0x75   : > { %1882 = vmatprep.mubr.msk.f32.mxu0 %vm356_vm0, %v311_v50 }
  0x78   : > { %1883 = vmatmul.mubr.msk.f32.gmra.mxu0 %vm356_vm0, %v312_v51 }
  0x79   : > { %1885 = vmatprep.mubr.msk.f32.mxu0 %vm356_vm0, %v313_v52 }
  0x7c   : > { %1886 = vmatmul.mubr.msk.f32.gmra.mxu0 %vm356_vm0, %v314_v53 }
  0x7d   : > { %1888 = vmatprep.mubr.msk.f32.mxu0 %vm356_vm0, %v315_v54 }
  0x80   : > { %1889 = vmatmul.mubr.msk.f32.gmra.mxu0 %vm356_vm0, %v316_v55 }
  0x81   : > { %1891 = vmatprep.mubr.msk.f32.mxu0 %vm356_vm0, %v317_v56 }
  0x84   : > { %1892 = vmatmul.mubr.msk.f32.gmra.mxu0 %vm356_vm0, %v318_v57 }
  0x85   : > { %1894 = vmatprep.mubr.msk.f32.mxu0 %vm356_vm0, %v319_v58 }
  0x88   : > { %1895 = vmatmul.mubr.msk.f32.gmra.mxu0 %vm356_vm0, %v320_v59 }
  0x89   : > { %1897 = vmatprep.mubr.msk.f32.mxu0 %vm356_vm0, %v321_v60 }
  0x8c   : > { %1898 = vmatmul.mubr.msk.f32.gmra.mxu0 %vm356_vm0, %v322_v61 }
  0x8d   : > { %1900 = vmatprep.mubr.msk.f32.mxu0 %vm356_vm0, %v323_v62  ;;  %v999_v62 = vld [vmem:[%s2737_s5] sm:$0x7] }
  0x90   : > { %1901 = vmatmul.mubr.msk.f32.gmra.mxu0 %vm356_vm0, %v324_v63 }
  0x91   : > { %1903 = vmatprep.mubr.msk.f32.mxu0 %vm356_vm0, %v325_v0 }
  0x94   : > { %1904 = vmatmul.mubr.msk.f32.gmra.mxu0 %vm356_vm0, %v326_v1  ;;  %v2147_v1 = vmov 0  }
  0x95   : > { %1906 = vmatprep.mubr.msk.f32.mxu0 %vm356_vm0, %v327_v2  ;;  %1956 = vset.pattern.permute.xlu0 %v2147_v1 }
  0x96   : > { %1002 = vperm.xlu0 %1956, %v999_v62  }
  0x98   : > { %1907 = vmatmul.mubr.msk.f32.gmra.mxu0 %vm356_vm0, %v328_v3 }
  0x99   : > { %1909 = vmatprep.mubr.msk.f32.mxu0 %vm356_vm0, %v329_v4 }
  0x9c   : > { %1910 = vmatmul.mubr.msk.f32.gmra.mxu0 %vm356_vm0, %v330_v5 }
  0x9d   : > { %1912 = vmatprep.mubr.msk.f32.mxu0 %vm356_vm0, %v331_v6 }
  0xa0   : > { %1913 = vmatmul.mubr.msk.f32.gmra.mxu0 %vm356_vm0, %v332_v7 }
  0xe4   : > { %v2395_v8 = vpop.f32.mrf.mxu0 }
  0xe6   : > { %v2397_v9 = vpop.f32.mrf.mxu0 }
  0xe8   : > { %v2399_v10 = vpop.f32.mrf.mxu0 }
  0xe9   : > { %v631_v62 = vadd.f32 %v2399_v10, %v2441_v39 }
  0xea   : > { %v2401_v11 = vpop.f32.mrf.mxu0 }
  0xec   : > { %v2403_v12 = vpop.f32.mrf.mxu0 }
  0xee   : > { %v2405_v13 = vpop.f32.mrf.mxu0 }
  0xf0   : > { %v2414_v15 = vpop.f32.mrf.mxu0 }
  0xf2   : > { %v2416_v16 = vpop.f32.mrf.mxu0 }
  0xf4   : > { %v2418_v17 = vpop.f32.mrf.mxu0 }
  0xf6   : > { %v2420_v18 = vpop.f32.mrf.mxu0 }
  0xf8   : > { %v1836_v19 = vpop.f32.mrf.mxu0 }
  0xf9   : > { %v671_v58 = vadd.f32 %v1836_v19, %v2441_v39  ;;  %v661_v19 = vadd.f32 %v2418_v17, %v2441_v39 }
  0xfa   : > { %v665_v20 = vpop.f32.mrf.mxu0 }
  0xfb   : > { %v666_v2 = vadd.f32 %v2441_v39, %v665_v20 }
  0xfc   : > { %v1839_v21 = vpop.f32.mrf.mxu0 }
  0xfd   : > { %v681_v49 = vadd.f32 %v1839_v21, %v2441_v39 }
  0xfe   : > { %v675_v22 = vpop.f32.mrf.mxu0 }
  0xff   : > { %v676_v53 = vadd.f32 %v2441_v39, %v675_v22 }
 0x100   : > { %v1842_v23 = vpop.f32.mrf.mxu0 }
 0x101   : > { %v691_v40 = vadd.f32 %v1842_v23, %v2441_v39 }
 0x102   : > { %v685_v24 = vpop.f32.mrf.mxu0 }
 0x103   : > { %v686_v45 = vadd.f32 %v2441_v39, %v685_v24 }
 0x104   : > { %v2422_v25 = vpop.f32.mrf.mxu0 }
 0x106   : > { %v2424_v26 = vpop.f32.mrf.mxu0 }
 0x108   : > { %v2426_v27 = vpop.f32.mrf.mxu0 }
 0x10a   : > { %v2428_v28 = vpop.f32.mrf.mxu0 }
 0x10b   : > { %v706_v1 = vadd.f32 %v2441_v39, %v2428_v28 }
 0x10c   : > { %v2430_v29 = vpop.f32.mrf.mxu0 }
 0x10e   : > { %v2432_v30 = vpop.f32.mrf.mxu0 }
 0x110   : > { %v2434_v31 = vpop.f32.mrf.mxu0 }
 0x112   : > { %v2436_v32 = vpop.f32.mrf.mxu0 }
 0x114   : > { %v1857_v33 = vpop.f32.mrf.mxu0 }
 0x115   : > { %v741_v5 = vadd.f32 %v1857_v33, %v2441_v39  ;;  %v656_v33 = vadd.f32 %v2441_v39, %v2420_v18 }
 0x116   : > { %v735_v34 = vpop.f32.mrf.mxu0 }
 0x117   : > { %v736_v22 = vadd.f32 %v2441_v39, %v735_v34 }
 0x118   : > { %v1860_v35 = vpop.f32.mrf.mxu0 }
 0x119   : > { %v751_v55 = vadd.f32 %v1860_v35, %v2441_v39 }
 0x11a   : > { %v745_v36 = vpop.f32.mrf.mxu0 }
 0x11b   : > { %v746_v61 = vadd.f32 %v2441_v39, %v745_v36  ;;  %v731_v36 = vadd.f32 %v2434_v31, %v2441_v39 }
 0x11c   : > { %v1863_v37 = vpop.f32.mrf.mxu0 }
 0x11d   : > { %v761_v47 = vadd.f32 %v1863_v37, %v2441_v39 }
 0x11e   : > { %v755_v38 = vpop.f32.mrf.mxu0 }
 0x11f   : > { %v756_v51 = vadd.f32 %v2441_v39, %v755_v38  ;;  %v651_v38 = vadd.f32 %v2414_v15, %v2441_v39 }
 0x120   : > { %v1866_v41 = vpop.f32.mrf.mxu0 }
 0x121   : > { %v771_v42 = vadd.f32 %v1866_v41, %v2441_v39  ;;  %v726_v41 = vadd.f32 %v2441_v39, %v2436_v32 }
 0x122   : > { %v765_v43 = vpop.f32.mrf.mxu0 }
 0x123   : > { %1957 = vtanh.f32 %v771_v42  ;;  %v766_v44 = vadd.f32 %v2441_v39, %v765_v43  ;;  %v646_v43 = vadd.f32 %v2441_v39, %v2416_v16 }
 0x124   : > { %1959 = vtanh.f32 %v691_v40  ;;  %v2447_v46 = vpop.f32.mrf.mxu0 }
 0x125   : > { %1961 = vtanh.f32 %v766_v44 }
 0x126   : > { %v2450_v48 = vpop.f32.mrf.mxu0  ;;  %1963 = vtanh.f32 %v686_v45  ;;  %v721_v45 = vadd.f32 %v2430_v29, %v2441_v39 }
 0x127   : > { %1965 = vtanh.f32 %v761_v47 }
 0x128   : > { %v2453_v50 = vpop.f32.mrf.mxu0  ;;  %1967 = vtanh.f32 %v681_v49  ;;  %v641_v49 = vadd.f32 %v2403_v12, %v2441_v39 }
 0x129   : > { %1969 = vtanh.f32 %v756_v51 }
 0x12a   : > { %v2456_v52 = vpop.f32.mrf.mxu0  ;;  %1971 = vtanh.f32 %v676_v53  ;;  %v716_v53 = vadd.f32 %v2441_v39, %v2432_v30 }
 0x12b   : > { %1973 = vtanh.f32 %v751_v55 }
 0x12c   : > { %v2459_v54 = vpop.f32.mrf.mxu0  ;;  %1975 = vtanh.f32 %v671_v58 }
 0x12d   : > { %1977 = vtanh.f32 %v746_v61 }
 0x12e   : > { %v2462_v56 = vpop.f32.mrf.mxu0  ;;  %1979 = vtanh.f32 %v666_v2 }
 0x12f   : > { %1981 = vtanh.f32 %v741_v5 }
 0x130   : > { %v1958_v57 = vpop.eup %1957  ;;  %v2465_v59 = vpop.f32.mrf.mxu0  ;;  %1983 = vtanh.f32 %v661_v19 }
 0x131   : > { %v1960_v60 = vpop.eup %1959  ;;  %1735 = vmatprep.subr.msk.mxu1 %vm1005_vm1, %v1958_v57  ;;  %1985 = vtanh.f32 %v736_v22  ;;  %v636_v57 = vadd.f32 %v2441_v39, %v2405_v13 }
 0x132   : > { %v1962_v63 = vpop.eup %1961  ;;  %v2472_v0 = vpop.f32.mrf.mxu0  ;;  %1736 = vmatpush3.xpose.msk.msra.mxu1 %vm1005_vm1, %v1960_v60  ;;  %1987 = vtanh.f32 %v656_v33  ;;  %v711_v60 = vadd.f32 %v2426_v27, %v2441_v39 }
 0x133   : > { %1737 = vmatprep.subr.msk.mxu1 %vm1005_vm1, %v1962_v63  ;;  %v1964_v4 = vpop.eup %1963  ;;  %1989 = vtanh.f32 %v731_v36 }
 0x134   : > { %v2477_v3 = vpop.f32.mrf.mxu0  ;;  %v1966_v6 = vpop.eup %1965  ;;  %1991 = vtanh.f32 %v651_v38 }
 0x135   : > { %v1968_v20 = vpop.eup %1967  ;;  %1993 = vtanh.f32 %v726_v41 }
 0x136   : > { %v2480_v7 = vpop.f32.mrf.mxu0  ;;  %1738 = vmatpush3.xpose.msk.msra.mxu1 %vm1005_vm1, %v1964_v4  ;;  %v1970_v23 = vpop.eup %1969  ;;  %1995 = vtanh.f32 %v646_v43  ;;  %v626_v4 = vadd.f32 %v2441_v39, %v2401_v11 }
 0x137   : > { %1739 = vmatprep.subr.msk.mxu1 %vm1005_vm1, %v1966_v6  ;;  %v1972_v17 = vpop.eup %1971  ;;  %1997 = vtanh.f32 %v721_v45  ;;  %v701_v6 = vadd.f32 %v2422_v25, %v2441_v39 }
 0x138   : > { %v2486_v21 = vpop.f32.mrf.mxu0  ;;  %v1974_v37 = vpop.eup %1973  ;;  %1999 = vtanh.f32 %v641_v49 }
 0x139   : > { %v1976_v18 = vpop.eup %1975  ;;  %2001 = vtanh.f32 %v716_v53 }
 0x13a   : > { %v2489_v24 = vpop.f32.mrf.mxu0  ;;  %1740 = vmatpush3.xpose.msk.msra.mxu1 %vm1005_vm1, %v1968_v20  ;;  %v1978_v31 = vpop.eup %1977  ;;  %2003 = vtanh.f32 %v636_v57  ;;  %v621_v20 = vadd.f32 %v2395_v8, %v2441_v39 }
 0x13b   : > { %1741 = vmatprep.subr.msk.mxu1 %vm1005_vm1, %v1970_v23  ;;  %v1980_v44 = vpop.eup %1979  ;;  %2005 = vtanh.f32 %v711_v60  ;;  %v696_v23 = vadd.f32 %v2441_v39, %v2424_v26 }
 0x13c   : > { %v2495_v35 = vpop.f32.mrf.mxu0  ;;  %v1982_v47 = vpop.eup %1981  ;;  %2007 = vtanh.f32 %v631_v62 }
 0x13d   : > { %v1984_v16 = vpop.eup %1983  ;;  %2009 = vtanh.f32 %v706_v1 }
 0x13e   : > { %v2499_v34 = vpop.f32.mrf.mxu0  ;;  %1742 = vmatpush3.xpose.msk.msra.mxu1 %vm1005_vm1, %v1972_v17  ;;  %v1986_v29 = vpop.eup %1985  ;;  %2011 = vtanh.f32 %v626_v4  ;;  %v616_v17 = vadd.f32 %v2441_v39, %v2397_v9 }
 0x13f   : > { %1743 = vmatprep.subr.msk.mxu1 %vm1005_vm1, %v1974_v37  ;;  %v1988_v58 = vpop.eup %1987  ;;  %2013 = vtanh.f32 %v701_v6 }
 0x140   : > { %v2505_v40 = vpop.f32.mrf.mxu0  ;;  %v1990_v61 = vpop.eup %1989  ;;  %2015 = vtanh.f32 %v621_v20 }
 0x141   : > { %v1992_v13 = vpop.eup %1991  ;;  %2017 = vtanh.f32 %v696_v23  ;;  %v851_v26 = vadd.f32 %v2505_v40, %v2441_v39 }
 0x142   : > { %v2509_v42 = vpop.f32.mrf.mxu0  ;;  %1744 = vmatpush3.xpose.msk.msra.mxu1 %vm1005_vm1, %v1976_v18  ;;  %v1994_v27 = vpop.eup %1993  ;;  %2019 = vtanh.f32 %v616_v17 }
 0x143   : > { %1745 = vmatprep.subr.msk.mxu1 %vm1005_vm1, %v1978_v31  ;;  %v1996_v5 = vpop.eup %1995  ;;  %v846_v45 = vadd.f32 %v2441_v39, %v2509_v42  ;;  %v836_v42 = vadd.f32 %v2441_v39, %v2499_v34 }
 0x144   : > { %v2515_v15 = vpop.f32.mrf.mxu0  ;;  %v1998_v19 = vpop.eup %1997 }
 0x145   : > { %v2000_v11 = vpop.eup %1999 }
 0x146   : > { %v2519_v32 = vpop.f32.mrf.mxu0  ;;  %1746 = vmatpush3.xpose.msk.msra.mxu1 %vm1005_vm1, %v1980_v44  ;;  %v2002_v33 = vpop.eup %2001 }
 0x147   : > { %1747 = vmatprep.subr.msk.mxu1 %vm1005_vm1, %v1982_v47  ;;  %v2004_v37 = vpop.eup %2003 }
 0x148   : > { %v2525_v51 = vpop.f32.mrf.mxu0  ;;  %v2006_v8 = vpop.eup %2005 }
 0x149   : > { %v2008_v41 = vpop.eup %2007 }
 0x14a   : > { %v2529_v55 = vpop.f32.mrf.mxu0  ;;  %1748 = vmatpush3.xpose.msk.msra.mxu1 %vm1005_vm1, %v1984_v16  ;;  %v2010_v43 = vpop.eup %2009  ;;  %v841_v16 = vadd.f32 %v2495_v35, %v2441_v39 }
 0x14b   : > { %1749 = vmatprep.subr.msk.mxu1 %vm1005_vm1, %v1986_v29  ;;  %v2012_v47 = vpop.eup %2011 }
 0x14c   : > { %v2535_v12 = vpop.f32.mrf.mxu0  ;;  %v2014_v49 = vpop.eup %2013 }
 0x14d   : > { %v2016_v53 = vpop.eup %2015 }
 0x14e   : > { %v2539_v30 = vpop.f32.mrf.mxu0  ;;  %1750 = vmatpush3.xpose.msk.msra.mxu1 %vm1005_vm1, %v1988_v58  ;;  %v2018_v57 = vpop.eup %2017 }
 0x14f   : > { %1751 = vmatprep.subr.msk.mxu1 %vm1005_vm1, %v1990_v61  ;;  %v2020_v58 = vpop.eup %2019  ;;  %v831_v61 = vadd.f32 %v2486_v21, %v2441_v39  ;;  %v826_v21 = vadd.f32 %v2441_v39, %v2489_v24 }
 0x150   : > { %v2545_v63 = vpop.f32.mrf.mxu0 }
 0x152   : > { %v2549_v2 = vpop.f32.mrf.mxu0  ;;  %1752 = vmatpush3.xpose.msk.msra.mxu1 %vm1005_vm1, %v1992_v13 }
 0x153   : > { %1753 = vmatprep.subr.msk.mxu1 %vm1005_vm1, %v1994_v27  ;;  %v886_v23 = vadd.f32 %v2441_v39, %v2549_v2  ;;  %v801_v2 = vadd.f32 %v2459_v54, %v2441_v39 }
 0x154   : > { %v2555_v10 = vpop.f32.mrf.mxu0 }
 0x155   : > { %v901_v27 = vadd.f32 %v2555_v10, %v2441_v39  ;;  %v816_v10 = vadd.f32 %v2441_v39, %v2480_v7 }
 0x156   : > { %v2559_v28 = vpop.f32.mrf.mxu0  ;;  %1754 = vmatpush3.xpose.msk.msra.mxu1 %vm1005_vm1, %v1996_v5  ;;  %v821_v5 = vadd.f32 %v2477_v3, %v2441_v39 }
 0x157   : > { %1755 = vmatprep.subr.msk.mxu1 %vm1005_vm1, %v1998_v19  ;;  %v896_v19 = vadd.f32 %v2441_v39, %v2559_v28  ;;  %v811_v28 = vadd.f32 %v2465_v59, %v2441_v39 }
 0x158   : > { %v1908_v22 = vpop.f32.mrf.mxu0 }
 0x159   : > { %v911_v60 = vadd.f32 %v1908_v22, %v2441_v39  ;;  %v891_v22 = vadd.f32 %v2545_v63, %v2441_v39  ;;  %v806_v63 = vadd.f32 %v2441_v39, %v2472_v0 }
 0x15a   : > { %v905_v25 = vpop.f32.mrf.mxu0  ;;  %1756 = vmatpush3.xpose.msk.msra.mxu1 %vm1005_vm1, %v2000_v11 }
 0x15b   : > { %1757 = vmatprep.subr.msk.mxu1 %vm1005_vm1, %v2002_v33  ;;  %v906_v13 = vadd.f32 %v2441_v39, %v905_v25  ;;  %v881_v25 = vadd.f32 %v2535_v12, %v2441_v39  ;;  %v796_v12 = vadd.f32 %v2441_v39, %v2462_v56 }
 0x15c   : > { %v1911_v36 = vpop.f32.mrf.mxu0 }
 0x15d   : > { %v921_v40 = vadd.f32 %v1911_v36, %v2441_v39  ;;  %v876_v36 = vadd.f32 %v2441_v39, %v2539_v30  ;;  %v791_v30 = vadd.f32 %v2453_v50, %v2441_v39 }
 0x15e   : > { %v915_v38 = vpop.f32.mrf.mxu0  ;;  %1758 = vmatpush3.xpose.msk.msra.mxu1 %vm1005_vm1, %v2004_v37 }
 0x15f   : > { %1759 = vmatprep.subr.msk.mxu1 %vm1005_vm1, %v2006_v8  ;;  %v916_v29 = vadd.f32 %v2441_v39, %v915_v38  ;;  %v871_v8 = vadd.f32 %v2525_v51, %v2441_v39  ;;  %v786_v51 = vadd.f32 %v2441_v39, %v2456_v52 }
 0x160   : > { %v1914_v18 = vpop.f32.mrf.mxu0 }
 0x161   : > { %v931_v31 = vadd.f32 %v1914_v18, %v2441_v39 }
 0x162   : > { %v925_v44 = vpop.f32.mrf.mxu0  ;;  %1760 = vmatpush3.xpose.msk.msra.mxu1 %vm1005_vm1, %v2008_v41  ;;  %v861_v41 = vadd.f32 %v2515_v15, %v2441_v39  ;;  %v776_v15 = vadd.f32 %v2441_v39, %v2450_v48 }
 0x163   : > { %2021 = vtanh.f32 %v931_v31  ;;  %v926_v9 = vadd.f32 %v2441_v39, %v925_v44  ;;  %1761 = vmatprep.subr.msk.mxu1 %vm1005_vm1, %v2010_v43  ;;  %v856_v43 = vadd.f32 %v2441_v39, %v2519_v32 }
 0x164   : > { %2023 = vtanh.f32 %v851_v26  ;;  %v866_v26 = vadd.f32 %v2441_v39, %v2529_v55  ;;  %v781_v55 = vadd.f32 %v2447_v46, %v2441_v39 }
 0x165   : > { %2025 = vtanh.f32 %v926_v9 }
 0x166   : > { %1762 = vmatpush3.xpose.msk.msra.mxu1 %vm1005_vm1, %v2012_v47  ;;  %2027 = vtanh.f32 %v846_v45 }
 0x167   : > { %1763 = vmatprep.subr.msk.mxu1 %vm1005_vm1, %v2014_v49  ;;  %2029 = vtanh.f32 %v921_v40  ;;  %v333_v49 = vld [vmem:[%s262_s11] sm:$0xf] }
 0x168   : > { %2031 = vtanh.f32 %v841_v16  ;;  %v335_v16 = vadd.s32 3, %v333_v49  ;;  %vm334_vm2 = vcmp.lt.s32.totalorder %v333_v49, 0 }
 0x169   : > { %2033 = vtanh.f32 %v916_v29  ;;  %v1343_v29 = vlaneseq }
 0x16a   : > { %1764 = vmatpush3.xpose.msk.msra.mxu1 %vm1005_vm1, %v2016_v53  ;;  %2035 = vtanh.f32 %v836_v42  ;;  %v336_v53 = vsel %vm334_vm2, %v335_v16, %v333_v49 }
 0x16b   : > { %1765 = vmatprep.subr.msk.mxu1 %vm1005_vm1, %v2018_v57  ;;  %2037 = vtanh.f32 %v911_v60  ;;  %vm337_vm3 = vcmp.lt.s32.totalorder %v336_v53, 0  ;;  %vm338_vm4 = vcmp.ge.s32.totalorder %v336_v53, 3  ;;  %v2682_v57 = vshrl.u32 %v1343_v29, 7 }
 0x16c   : > { %2039 = vtanh.f32 %v831_v61  ;;  %vm339_vm5 = vmor %vm337_vm3, %vm338_vm4  ;;  %vm1429_vm11 = vcmp.lt.s32.totalorder %v1343_v29, 512 }
 0x16d   : > { %2041 = vtanh.f32 %v906_v13  ;;  %v340_v60 = vsel %vm339_vm5, 0, %v336_v53 }
 0x16e   : > { %1766 = vmatpush3.xpose.msk.msra.mxu1 %vm1005_vm1, %v2020_v58  ;;  %2043 = vtanh.f32 %v826_v21  ;;  %v1347_v58 = vsub.s32 0, %v2682_v57 }
 0x16f   : > { %2045 = vtanh.f32 %v901_v27 }
 0x170   : > { %v2022_v35 = vpop.eup %2021  ;;  %2047 = vtanh.f32 %v821_v5  ;;  %v1348_v13 = vrot.slane %v340_v60, %v1347_v58 }
 0x171   : > { %v2024_v62 = vpop.eup %2023  ;;  %1768 = vmatmul.mubr.msk.f32.vlgmr.msra.gmra.mxu1 %vm1005_vm1, %v2410_v14  ;;  %1769 = vmatprep.subr.msk.mxu1 %vm1005_vm1, %v2022_v35  ;;  %2049 = vtanh.f32 %v896_v19 }
 0x172   : > { %v2026_v34 = vpop.eup %2025  ;;  %1770 = vmatpush3.xpose.msk.msra.mxu1 %vm1005_vm1, %v2024_v62  ;;  %1801 = vmatprep.mubr.msk.f32.mxu1 %vm1005_vm1, %v2410_v14  ;;  %2051 = vtanh.f32 %v816_v10  ;;  %v1003_v62 = vpop.permute.xlu0 %1002  ;;  %vm1361_vm7 = vcmp.eq.s32.totalorder %v2682_v57, %v1348_v13 }
 0x173   : > { %1771 = vmatprep.subr.msk.mxu1 %vm1005_vm1, %v2026_v34  ;;  %v2028_v1 = vpop.eup %2027  ;;  %2053 = vtanh.f32 %v891_v22 }
 0x174   : > { %v2030_v4 = vpop.eup %2029  ;;  %2055 = vtanh.f32 %v811_v28 }
 0x175   : > { %v2032_v6 = vpop.eup %2031  ;;  %2057 = vtanh.f32 %v886_v23 }
 0x176   : > { %1772 = vmatpush3.xpose.msk.msra.mxu1 %vm1005_vm1, %v2028_v1  ;;  %v2034_v24 = vpop.eup %2033  ;;  %2059 = vtanh.f32 %v806_v63 }
 0x177   : > { %1773 = vmatprep.subr.msk.mxu1 %vm1005_vm1, %v2030_v4  ;;  %v2036_v20 = vpop.eup %2035  ;;  %2061 = vtanh.f32 %v881_v25 }
 0x178   : > { %v2038_v3 = vpop.eup %2037  ;;  %2063 = vtanh.f32 %v801_v2 }
 0x179   : > { %v2040_v11 = vpop.eup %2039  ;;  %2065 = vtanh.f32 %v876_v36 }
 0x17a   : > { %1774 = vmatpush3.xpose.msk.msra.mxu1 %vm1005_vm1, %v2032_v6  ;;  %v2042_v7 = vpop.eup %2041  ;;  %2067 = vtanh.f32 %v796_v12  ;;  %v1355_v6 = vsub.s32 2, %v2682_v57 }
 0x17b   : > { %1775 = vmatprep.subr.msk.mxu1 %vm1005_vm1, %v2034_v24  ;;  %v2044_v33 = vpop.eup %2043  ;;  %2069 = vtanh.f32 %v871_v8  ;;  %v1359_v24 = vsub.s32 3, %v2682_v57 }
 0x17c   : > { %v2046_v59 = vpop.eup %2045  ;;  %2071 = vtanh.f32 %v791_v30 }
 0x17d   : > { %v2048_v17 = vpop.eup %2047  ;;  %2073 = vtanh.f32 %v866_v26 }
 0x17e   : > { %1776 = vmatpush3.xpose.msk.msra.mxu1 %vm1005_vm1, %v2036_v20  ;;  %v2050_v0 = vpop.eup %2049  ;;  %2075 = vtanh.f32 %v786_v51  ;;  %v1356_v20 = vrot.slane %v340_v60, %v1355_v6 }
 0x17f   : > { %1777 = vmatprep.subr.msk.mxu1 %vm1005_vm1, %v2038_v3  ;;  %v2052_v37 = vpop.eup %2051  ;;  %2077 = vtanh.f32 %v861_v41  ;;  %v1360_v3 = vrot.slane %v340_v60, %v1359_v24 }
 0x180   : > { %v2054_v54 = vpop.eup %2053  ;;  %2079 = vtanh.f32 %v781_v55  ;;  %vm1363_vm9 = vcmp.eq.s32.totalorder %v2682_v57, %v1356_v20 }
 0x181   : > { %v2056_v38 = vpop.eup %2055  ;;  %2081 = vtanh.f32 %v856_v43  ;;  %vm1364_vm10 = vcmp.eq.s32.totalorder %v2682_v57, %v1360_v3 }
 0x182   : > { %1778 = vmatpush3.xpose.msk.msra.mxu1 %vm1005_vm1, %v2040_v11  ;;  %v2058_v56 = vpop.eup %2057  ;;  %2083 = vtanh.f32 %v776_v15 }
 0x183   : > { %1779 = vmatprep.subr.msk.mxu1 %vm1005_vm1, %v2042_v7  ;;  %v2060_v18 = vpop.eup %2059 }
 0x184   : > { %v2062_v50 = vpop.eup %2061 }
 0x185   : > { %v2064_v31 = vpop.eup %2063 }
 0x186   : > { %1780 = vmatpush3.xpose.msk.msra.mxu1 %vm1005_vm1, %v2044_v33  ;;  %v2066_v52 = vpop.eup %2065 }
 0x187   : > { %1781 = vmatprep.subr.msk.mxu1 %vm1005_vm1, %v2046_v59  ;;  %v2068_v44 = vpop.eup %2067 }
 0x188   : > { %v2070_v9 = vpop.eup %2069 }
 0x189   : > { %v2072_v46 = vpop.eup %2071 }
 0x18a   : > { %1782 = vmatpush3.xpose.msk.msra.mxu1 %vm1005_vm1, %v2048_v17  ;;  %v2074_v32 = vpop.eup %2073 }
 0x18b   : > { %1783 = vmatprep.subr.msk.mxu1 %vm1005_vm1, %v2050_v0  ;;  %v2076_v45 = vpop.eup %2075 }
 0x18c   : > { %v2078_v47 = vpop.eup %2077 }
 0x18d   : > { %v2080_v39 = vpop.eup %2079 }
 0x18e   : > { %1784 = vmatpush3.xpose.msk.msra.mxu1 %vm1005_vm1, %v2052_v37  ;;  %v2082_v48 = vpop.eup %2081 }
 0x18f   : > { %1785 = vmatprep.subr.msk.mxu1 %vm1005_vm1, %v2054_v54  ;;  %v2084_v40 = vpop.eup %2083 }
 0x192   : > { %1786 = vmatpush3.xpose.msk.msra.mxu1 %vm1005_vm1, %v2056_v38 }
 0x193   : > { %1787 = vmatprep.subr.msk.mxu1 %vm1005_vm1, %v2058_v56  ;;  %v2148_v56 = vmov 1966171168  }
 0x194   : > { %v1405_v51 = vunpack.c.l.s4 %v2148_v56 }
 0x196   : > { %1788 = vmatpush3.xpose.msk.msra.mxu1 %vm1005_vm1, %v2060_v18 }
 0x197   : > { %1789 = vmatprep.subr.msk.mxu1 %vm1005_vm1, %v2062_v50 }
 0x19a   : > { %1790 = vmatpush3.xpose.msk.msra.mxu1 %vm1005_vm1, %v2064_v31 }
 0x19b   : > { %1791 = vmatprep.subr.msk.mxu1 %vm1005_vm1, %v2066_v52  ;;  %v1406_v52 = vunpack.c.0.s8 %v1405_v51 }
 0x19e   : > { %1792 = vmatpush3.xpose.msk.msra.mxu1 %vm1005_vm1, %v2068_v44 }
 0x19f   : > { %1793 = vmatprep.subr.msk.mxu1 %vm1005_vm1, %v2070_v9 }
 0x1a2   : > { %1794 = vmatpush3.xpose.msk.msra.mxu1 %vm1005_vm1, %v2072_v46 }
 0x1a3   : > { %1795 = vmatprep.subr.msk.mxu1 %vm1005_vm1, %v2074_v32 }
 0x1a6   : > { %1796 = vmatpush3.xpose.msk.msra.mxu1 %vm1005_vm1, %v2076_v45  ;;  %v1409_v45 = vsub.s32 %v1406_v52, %v2682_v57 }
 0x1a7   : > { %1797 = vmatprep.subr.msk.mxu1 %vm1005_vm1, %v2078_v47 }
 0x1aa   : > { %1798 = vmatpush3.xpose.msk.msra.mxu1 %vm1005_vm1, %v2080_v39 }
 0x1ab   : > { %1799 = vmatprep.subr.msk.mxu1 %vm1005_vm1, %v2082_v48 }
 0x1ae   : > { %1800 = vmatpush3.xpose.msk.msra.mxu1 %vm1005_vm1, %v2084_v40 }
 0x1b1   : > { %1802 = vmatmul.mubr.msk.f32.vlgmr.msra.gmra.mxu1 %vm1005_vm1, %v2410_v14  ;;  %v1351_v14 = vsub.s32 1, %v2682_v57 }
 0x1b3   : > { %v1352_v61 = vrot.slane %v340_v60, %v1351_v14 }
 0x1b5   : > { %vm1362_vm6 = vcmp.eq.s32.totalorder %v2682_v57, %v1352_v61 }
 0x231   : > { %v1267_v42 = vpop.f32.mrf.mxu1 }
 0x232   : > { %v1268_v21 = vadd.f32 %v1267_v42, %v1003_v62 }
 0x233   : > { %v1269_v35 = vpop.f32.mrf.mxu1 }
 0x234   : > { %v1270_v34 = vadd.f32 %v1269_v35, %v1003_v62  ;;  %v1365_v27 = vsel %vm1361_vm7, %v1268_v21, 0.0 }
 0x235   : > { %v1370_v5 = vsel %vm1369_vm8, %v1365_v27, 0.0 }
 0x236   : > { %v1366_v1 = vsel %vm1362_vm6, %v1270_v34, 0.0  ;;  %v1371_v10 = vrot.slane %v1370_v5, 4 }
 0x237   : > { %v1377_v4 = vsel %vm1369_vm8, %v1366_v1, 0.0 }
 0x238   : > { %v1378_v19 = vrot.slane %v1377_v4, 4  ;;  %v1372_v28 = vadd.f32 %v1371_v10, %v1370_v5 }
 0x23a   : > { %v1379_v22 = vadd.f32 %v1378_v19, %v1377_v4  ;;  %v1373_v33 = vrot.slane %v1372_v28, 2 }
 0x23c   : > { %v1380_v23 = vrot.slane %v1379_v22, 2  ;;  %v1374_v37 = vadd.f32 %v1373_v33, %v1372_v28 }
 0x23e   : > { %v1381_v17 = vadd.f32 %v1380_v23, %v1379_v22  ;;  %v1375_v18 = vrot.slane %v1374_v37, 1 }
 0x240   : > { %v1382_v30 = vrot.slane %v1381_v17, 1  ;;  %v1376_v15 = vadd.f32 %v1375_v18, %v1374_v37 }
 0x242   : > { %v1383_v55 = vadd.f32 %v1382_v30, %v1381_v17 }
 0x244   : > { %v1402_v9 = vcombine.low %v1376_v15, %v1383_v55 }
 0x246   : > { %v1410_v39 = vrot.slane %v1402_v9, %v1409_v45 }
 0x271   : > { %v1338_v11 = vpop.f32.mrf.mxu1 }
 0x272   : > { %v1339_v7 = vadd.f32 %v1338_v11, %v1003_v62 }
 0x273   : > { %v1340_v63 = vpop.f32.mrf.mxu1 }
 0x274   : > { %v1367_v25 = vsel %vm1363_vm9, %v1339_v7, 0.0  ;;  %v1341_v59 = vadd.f32 %v1340_v63, %v1003_v62 }
 0x275   : > { %v1384_v2 = vsel %vm1369_vm8, %v1367_v25, 0.0 }
 0x276   : > { %v1385_v36 = vrot.slane %v1384_v2, 4  ;;  %v1368_v0 = vsel %vm1364_vm10, %v1341_v59, 0.0 }
 0x277   : > { %v1391_v12 = vsel %vm1369_vm8, %v1368_v0, 0.0 }
 0x278   : > { %v1386_v8 = vadd.f32 %v1385_v36, %v1384_v2  ;;  %v1392_v54 = vrot.slane %v1391_v12, 4 }
 0x27a   : > { %v1387_v38 = vrot.slane %v1386_v8, 2  ;;  %v1393_v26 = vadd.f32 %v1392_v54, %v1391_v12 }
 0x27c   : > { %v1388_v41 = vadd.f32 %v1387_v38, %v1386_v8  ;;  %v1394_v50 = vrot.slane %v1393_v26, 2 }
 0x27e   : > { %v1389_v31 = vrot.slane %v1388_v41, 1  ;;  %v1395_v43 = vadd.f32 %v1394_v50, %v1393_v26 }
 0x280   : > { %v1396_v44 = vrot.slane %v1395_v43, 1  ;;  %v1390_v46 = vadd.f32 %v1389_v31, %v1388_v41 }
 0x282   : > { %v1397_v32 = vadd.f32 %v1396_v44, %v1395_v43 }
 0x284   : > { %v1403_v47 = vcombine.low %v1390_v46, %v1397_v32 }
 0x286   : > { %v1417_v48 = vrot.slane %v1403_v47, %v1409_v45 }
 0x288   : > { %v1418_v40 = vcombine.low %v1410_v39, %v1417_v48 }
 0x28a   : > { %v1425_v49 = vrot.slane %v1418_v40, %v1409_v45 }
 0x28c   : > { %1431 = vst.msk [vmem:[%s258_s14] sm:$0xf] %vm1429_vm11, %v1425_v49 }
 0x28d   : > { %2098 = shalt.err (!%p2095_p4)
}
 0x28e   : > { %s2099_s9 = scalar_lea.hbm %s1445_s18, 64  ;;  %s2103_s11 = scalar_lea.hbm %s2738_s6, 128 }
 0x28f   : > { %p2100_p7 = scmp.ne.s32.totalorder %s1445_s18, %s2099_s9  ;;  %p2104_p10 = scmp.lt.s32.totalorder %s1445_s18, %s2738_s6 }
 0x290   : > { %p2105_p11 = scmp.lt.s32.totalorder %s2103_s11, %s2099_s9 }
 0x291   : > { %p2101_p8 = pnand %p2100_p7, %p2223_p5 }
 0x292   : > { %p2106_p12 = por %p2105_p11, %p2104_p10 }
 0x293   : > { %p2102_p9 = pneg %p2101_p8 }
 0x295   : > { %p2107_p13 = pnand %p2106_p12, %p2102_p9 }
 0x297   : > { %2110 = shalt.err (!%p2107_p13)
}
 0x298   : > { %1915 = dma.vmem_to_hbm [thread:$0]  (%p2223_p5), %s1448_s15, 64, %s1445_s18, %s1433_s19  }
 0x299 PF: > { %p1921_p0 = scmp.ge.s32.totalorder %s2145_s24, 2  ;;  %s1459_s14 = sand.u32 1, %s2133_s21  }
 0x29a   : > { %s1460_s16 = scalar_lea.sflag [#allocation3], %s1459_s14 }
 0x29b   : > { %p1918_p1 = pnand %p1921_p0, %p2227_p6 }
 0x29d   : > { %p1919_p2 = pneg %p1918_p1 }
 0x29f   : > { %2128 = dma.done.wait (%p1919_p2), %s1460_s16, 64  }
 0x2a0   : > { %2130 = vsyncadd (%p1919_p2), %s1460_s16, 4294967232  ;;  %p16_p3 = scmp.ge.s32.totalorder %s2210_s27, 4   ;;  %s2741_s21 = smov %s2137_s22 }
 0x2a1   : > { %s2742_s22 = smov %s2141_s23  ;;  %s2743_s23 = smov %s2221_s30 }
 0x2a2   : > { %s2744_s24 = smov %s2210_s27  ;;  %18 = sbr.rel (!%p16_p3) target bundleno = 3 (0x3), region = 82 }
 0x2a7   :  { %1465 = vsyncpa [#allocation3], 1 }
 0x2a8   :  { %1467 = vsyncpa [#allocation3 + $0x1], 1 }

</bundles_post_ra>
